<compile_context>
chip_gen: v7x
topology: tpu7x:2x2x1
jax: 0.10.0
libtpu: 0.0.40
codegen_flags: <defaults>
</compile_context>

<pallas_src>
import jax
import jax.numpy as jnp
from jax.experimental import pallas as pl
from jax.experimental.pallas import tpu as pltpu


HEAD_PAD = 128  # heads output padded 82 -> 128 lanes (lane-dense final store)
HEAD_SLICES = {"root_orient": (0, 3), "betas": (3, 13),
               "pose_body": (13, 76), "pose_hand": (76, 82)}


# ----------------------------------------------------------------------------
# Fused kernel: conv x4 + flatten + fc + heads, for ONE batch element.
# ----------------------------------------------------------------------------
def _fused_forward_kernel(x_ref,
                          lm0_ref, cm0_ref, b0_ref,
                          lm1_ref, cm1_ref, b1_ref,
                          lm2_ref, cm2_ref, b2_ref,
                          lm3_ref, cm3_ref, b3_ref,
                          wfc_ref, bfc_ref, wh_ref, bh_ref,
                          o_ref):
    x = x_ref[0]                                     # (C*H, W) f32
    layers = ((lm0_ref, cm0_ref, b0_ref),
              (lm1_ref, cm1_ref, b1_ref),
              (lm2_ref, cm2_ref, b2_ref),
              (lm3_ref, cm3_ref, b3_ref))
    for lm_ref, cm_ref, b_ref in layers:
        acc = None
        for kx in range(3):                          # unrolled: 3 tap columns
            t = jnp.dot(lm_ref[kx], x, preferred_element_type=jnp.float32)
            t = jnp.dot(t, cm_ref[kx], preferred_element_type=jnp.float32)
            acc = t if acc is None else acc + t
        # bias + ReLU on the f32 accumulator (v5e-friendly epilogue).
        x = jnp.maximum(acc + b_ref[...], 0.0)       # -> (CO*OH, OW)

    # Flatten in torch's (c, h, w) order == concatenate the rows of x; fold
    # the concatenation into the fc matmul by slicing fc_w into row chunks.
    wfc = wfc_ref[...]                               # (fc_in, F)
    enc = bfc_ref[...]                               # (1, F)
    n_rows, ow = x.shape
    for r in range(n_rows):
        enc = enc + jnp.dot(x[r:r + 1, :], wfc[r * ow:(r + 1) * ow, :],
                            preferred_element_type=jnp.float32)

    # Four prediction heads fused into one lane-dense (128-wide) matmul.
    heads = jnp.dot(enc, wh_ref[...], preferred_element_type=jnp.float32)
    o_ref[0] = heads + bh_ref[...]                   # (1, 128) full-lane store


# ----------------------------------------------------------------------------
# One-time weight preparation (outside the jitted forward)
# ----------------------------------------------------------------------------
def _conv_layer_constants(w, b, H, W):
    """Fold Conv2d(CI, CO, 3, stride=2, pad=1) into banded-matmul operands.

    Returns:
      lm:   (3, CO*OH, CI*H)  per-kx row-tap gather fused with the weights
      cm:   (3, W, OW)        one-hot stride-2 column gather per kx
      bcol: (CO*OH, 1)        bias broadcast column
    """
    CO, CI, KH, KW = w.shape
    OH, OW = H // 2, W // 2
    w = w.astype(jnp.float32)
    # sel[ky, oy, iy] = [iy == 2*oy + ky - 1]; out-of-range rows (the zero
    # padding) simply select nothing.
    sel = (jnp.arange(H)[None, None, :]
           == 2 * jnp.arange(OH)[None, :, None]
           + jnp.arange(KH)[:, None, None] - 1).astype(jnp.float32)
    lm = jnp.einsum("oikx,kph->xopih", w, sel).reshape(KW, CO * OH, CI * H)
    # cm[kx, ix, ox] = [ix == 2*ox + kx - 1]
    cm = (jnp.arange(W)[None, :, None]
          == 2 * jnp.arange(OW)[None, None, :]
          + jnp.arange(KW)[:, None, None] - 1).astype(jnp.float32)
    bcol = jnp.repeat(b.astype(jnp.float32), OH).reshape(CO * OH, 1)
    return lm, cm, bcol


def prepare_kernel_constants(params, H, W, backbone_f_len):
    """Build all fused-kernel constants once (pre-concat heads, pad to 128)."""
    assert H % 16 == 0 and W % 16 == 0, "four stride-2 convs need /16 spatial"
    consts = {}
    h, w = H, W
    for i in range(4):
        lm, cm, bc = _conv_layer_constants(
            params[f"conv{i}_w"], params[f"conv{i}_b"], h, w)
        consts[f"lm{i}"] = lm
        consts[f"cm{i}"] = cm
        consts[f"bc{i}"] = bc
        h, w = h // 2, w // 2
    consts["wfc"] = params["fc_w"].astype(jnp.float32)               # (fc_in, F)
    consts["bfc"] = params["fc_b"].reshape(1, -1).astype(jnp.float32)
    # Pre-concatenate the four head Linears and zero-pad to 128 output lanes.
    w_heads = jnp.concatenate([params["root_w"], params["betas_w"],
                               params["pbody_w"], params["phand_w"]], axis=1)
    b_heads = jnp.concatenate([params["root_b"], params["betas_b"],
                               params["pbody_b"], params["phand_b"]], axis=0)
    n_real = w_heads.shape[1]
    consts["wh"] = jnp.zeros((backbone_f_len, HEAD_PAD),
                             jnp.float32).at[:, :n_real].set(w_heads.astype(jnp.float32))
    consts["bh"] = jnp.zeros((1, HEAD_PAD),
                             jnp.float32).at[0, :n_real].set(b_heads.astype(jnp.float32))
    return consts


# ----------------------------------------------------------------------------
# ConvModel.forward (single pallas_call)
# ----------------------------------------------------------------------------
def conv_model_forward(consts, image_crop, root_loc):
    """image_crop: (B, C, H, W) NCHW f32, root_loc: (B, 3)."""
    B, C, H, W = image_crop.shape
    x = image_crop.astype(jnp.float32).reshape(B, C * H, W)   # free reshape

    operands = (x,
                consts["lm0"], consts["cm0"], consts["bc0"],
                consts["lm1"], consts["cm1"], consts["bc1"],
                consts["lm2"], consts["cm2"], consts["bc2"],
                consts["lm3"], consts["cm3"], consts["bc3"],
                consts["wfc"], consts["bfc"], consts["wh"], consts["bh"])

    def _const_spec(a):
        if a.ndim == 3:
            return pl.BlockSpec(a.shape, lambda b: (0, 0, 0))
        return pl.BlockSpec(a.shape, lambda b: (0, 0))

    in_specs = [pl.BlockSpec((1, C * H, W), lambda b: (b, 0, 0))]
    in_specs += [_const_spec(a) for a in operands[1:]]

    heads_pad = pl.pallas_call(
        _fused_forward_kernel,
        out_shape=jax.ShapeDtypeStruct((B, 1, HEAD_PAD), jnp.float32),
        grid=(B,),
        in_specs=in_specs,
        out_specs=pl.BlockSpec((1, 1, HEAD_PAD), lambda b: (b, 0, 0)),
        compiler_params=pltpu.CompilerParams(
            dimension_semantics=("parallel",)),
    )(*operands)

    heads = heads_pad.reshape(B, HEAD_PAD)
    predictions = {"root_loc": root_loc}
    for name, (lo, hi) in HEAD_SLICES.items():
        predictions[name] = heads[:, lo:hi]
    # TODO(synk): predictions["vertices"] = BodyModel(...) (SMPL mesh) omitted.
    return predictions


# ----------------------------------------------------------------------------
# Deterministic parameter construction (synthetic, torch-like uniform init)
# ----------------------------------------------------------------------------
def _uniform(key, shape, fan_in):
    bound = 1.0 / jnp.sqrt(jnp.float32(fan_in))
    return jax.random.uniform(key, shape, jnp.float32, -bound, bound)


def make_params(key, in_ch, H, W, backbone_f_len):
    p = {}
    keys = jax.random.split(key, 16)
    conv_cfg = [(in_ch, 5), (5, 5), (5, 5), (5, 1)]
    for i, (ci, co) in enumerate(conv_cfg):
        fan_in = ci * 9
        p[f"conv{i}_w"] = _uniform(keys[2 * i], (co, ci, 3, 3), fan_in)
        p[f"conv{i}_b"] = _uniform(keys[2 * i + 1], (co,), fan_in)
    fc_in = 1 * (H // 16) * (W // 16)   # consistent conv-output size (see TODO)
    p["fc_w"] = _uniform(keys[8], (fc_in, backbone_f_len), fc_in)
    p["fc_b"] = _uniform(keys[9], (backbone_f_len,), fc_in)
    p["root_w"] = _uniform(keys[10], (backbone_f_len, 3), backbone_f_len)
    p["root_b"] = _uniform(keys[11], (3,), backbone_f_len)
    p["betas_w"] = _uniform(keys[12], (backbone_f_len, 10), backbone_f_len)
    p["betas_b"] = _uniform(keys[13], (10,), backbone_f_len)
    p["pbody_w"] = _uniform(keys[14], (backbone_f_len, 63), backbone_f_len)
    p["pbody_b"] = _uniform(keys[15], (63,), backbone_f_len)
    k2 = jax.random.split(keys[15], 3)
    p["phand_w"] = _uniform(k2[0], (backbone_f_len, 6), backbone_f_len)
    p["phand_b"] = _uniform(k2[1], (6,), backbone_f_len)
    return p


# ----------------------------------------------------------------------------
# Pure-JAX reference (for correctness check only)
# ----------------------------------------------------------------------------
def reference_forward(params, image_crop, root_loc):
    hp = jax.lax.Precision.HIGHEST
    x = image_crop.astype(jnp.float32)
    for i in range(4):
        w = params[f"conv{i}_w"]
        b = params[f"conv{i}_b"]
        x = jax.lax.conv_general_dilated(
            x, w, window_strides=(2, 2), padding=((1, 1), (1, 1)),
            dimension_numbers=("NCHW", "OIHW", "NCHW"), precision=hp)
        x = jnp.maximum(x + b[None, :, None, None], 0.0)
    B = x.shape[0]
    x = x.reshape(B, -1)
    enc = jnp.dot(x, params["fc_w"], precision=hp) + params["fc_b"]
    return {
        "root_loc": root_loc,
        "root_orient": jnp.dot(enc, params["root_w"], precision=hp) + params["root_b"],
        "betas": jnp.dot(enc, params["betas_w"], precision=hp) + params["betas_b"],
        "pose_body": jnp.dot(enc, params["pbody_w"], precision=hp) + params["pbody_b"],
        "pose_hand": jnp.dot(enc, params["phand_w"], precision=hp) + params["phand_b"],
    }


if __name__ == "__main__":
    B, C, H, W = 2, 3, 32, 32
    BACKBONE_F_LEN = 128

    key = jax.random.PRNGKey(0)
    k_param, k_img, k_root = jax.random.split(key, 3)
    params = make_params(k_param, C, H, W, BACKBONE_F_LEN)
    consts = prepare_kernel_constants(params, H, W, BACKBONE_F_LEN)
    image_crop = jax.random.normal(k_img, (B, C, H, W), jnp.float32)
    root_loc = jax.random.normal(k_root, (B, 3), jnp.float32)

    fwd = jax.jit(conv_model_forward)
    preds = jax.block_until_ready(fwd(consts, image_crop, root_loc))

    assert preds["root_orient"].shape == (B, 3)
    assert preds["betas"].shape == (B, 10)
    assert preds["pose_body"].shape == (B, 63)
    assert preds["pose_hand"].shape == (B, 6)
    assert preds["root_loc"].shape == (B, 3)

    ref = reference_forward(params, image_crop, root_loc)
    for name in ("root_orient", "betas", "pose_body", "pose_hand"):
        assert jnp.allclose(preds[name], ref[name], atol=2e-2, rtol=2e-2), name

    print("KERNEL_OK")
</pallas_src>

<mosaic_0001>
module attributes {stable_mosaic.version = 11 : i64} {
  func.func @_fused_forward_kernel(%arg0: i32, %arg1: memref<1x96x32xf32, #tpu.memory_space<vmem>>, %arg2: memref<3x80x96xf32, #tpu.memory_space<vmem>>, %arg3: memref<3x32x16xf32, #tpu.memory_space<vmem>>, %arg4: memref<80x1xf32, #tpu.memory_space<vmem>>, %arg5: memref<3x40x80xf32, #tpu.memory_space<vmem>>, %arg6: memref<3x16x8xf32, #tpu.memory_space<vmem>>, %arg7: memref<40x1xf32, #tpu.memory_space<vmem>>, %arg8: memref<3x20x40xf32, #tpu.memory_space<vmem>>, %arg9: memref<3x8x4xf32, #tpu.memory_space<vmem>>, %arg10: memref<20x1xf32, #tpu.memory_space<vmem>>, %arg11: memref<3x2x20xf32, #tpu.memory_space<vmem>>, %arg12: memref<3x4x2xf32, #tpu.memory_space<vmem>>, %arg13: memref<2x1xf32, #tpu.memory_space<vmem>>, %arg14: memref<4x128xf32, #tpu.memory_space<vmem>>, %arg15: memref<1x128xf32, #tpu.memory_space<vmem>>, %arg16: memref<128x128xf32, #tpu.memory_space<vmem>>, %arg17: memref<1x128xf32, #tpu.memory_space<vmem>>, %arg18: memref<1x1x128xf32, #tpu.memory_space<vmem>>) attributes {dimension_semantics = [#tpu.dimension_semantics<parallel>], iteration_bounds = array<i64: 2>, scalar_prefetch = 0 : i64, scratch_operands = 0 : i64, tpu.core_type = #tpu.core_type<tc>, window_params = [{transform_indices = @transform_0, window_bounds = array<i64: 1, 96, 32>}, {pipeline_mode = #tpu.pipeline_mode<synchronous>, transform_indices = @transform_1, window_bounds = array<i64: 3, 80, 96>}, {pipeline_mode = #tpu.pipeline_mode<synchronous>, transform_indices = @transform_2, window_bounds = array<i64: 3, 32, 16>}, {pipeline_mode = #tpu.pipeline_mode<synchronous>, transform_indices = @transform_3, window_bounds = array<i64: 80, 1>}, {pipeline_mode = #tpu.pipeline_mode<synchronous>, transform_indices = @transform_4, window_bounds = array<i64: 3, 40, 80>}, {pipeline_mode = #tpu.pipeline_mode<synchronous>, transform_indices = @transform_5, window_bounds = array<i64: 3, 16, 8>}, {pipeline_mode = #tpu.pipeline_mode<synchronous>, transform_indices = @transform_6, window_bounds = array<i64: 40, 1>}, {pipeline_mode = #tpu.pipeline_mode<synchronous>, transform_indices = @transform_7, window_bounds = array<i64: 3, 20, 40>}, {pipeline_mode = #tpu.pipeline_mode<synchronous>, transform_indices = @transform_8, window_bounds = array<i64: 3, 8, 4>}, {pipeline_mode = #tpu.pipeline_mode<synchronous>, transform_indices = @transform_9, window_bounds = array<i64: 20, 1>}, {pipeline_mode = #tpu.pipeline_mode<synchronous>, transform_indices = @transform_10, window_bounds = array<i64: 3, 2, 20>}, {pipeline_mode = #tpu.pipeline_mode<synchronous>, transform_indices = @transform_11, window_bounds = array<i64: 3, 4, 2>}, {pipeline_mode = #tpu.pipeline_mode<synchronous>, transform_indices = @transform_12, window_bounds = array<i64: 2, 1>}, {pipeline_mode = #tpu.pipeline_mode<synchronous>, transform_indices = @transform_13, window_bounds = array<i64: 4, 128>}, {pipeline_mode = #tpu.pipeline_mode<synchronous>, transform_indices = @transform_14, window_bounds = array<i64: 1, 128>}, {pipeline_mode = #tpu.pipeline_mode<synchronous>, transform_indices = @transform_15, window_bounds = array<i64: 128, 128>}, {pipeline_mode = #tpu.pipeline_mode<synchronous>, transform_indices = @transform_16, window_bounds = array<i64: 1, 128>}, {transform_indices = @transform_17, window_bounds = array<i64: 1, 1, 128>}]} {
    %c0 = arith.constant 0 : index
    %c0_0 = arith.constant 0 : index
    %c0_1 = arith.constant 0 : index
    %0 = vector.load %arg1[%c0, %c0_0, %c0_1] : memref<1x96x32xf32, #tpu.memory_space<vmem>>, vector<1x96x32xf32>
    %1 = vector.shape_cast %0 : vector<1x96x32xf32> to vector<96x32xf32>
    %c0_2 = arith.constant 0 : index
    %c0_3 = arith.constant 0 : index
    %c0_4 = arith.constant 0 : index
    %2 = vector.load %arg2[%c0_2, %c0_3, %c0_4] : memref<3x80x96xf32, #tpu.memory_space<vmem>>, vector<1x80x96xf32>
    %3 = vector.shape_cast %2 : vector<1x80x96xf32> to vector<80x96xf32>
    %cst = arith.constant dense<0.000000e+00> : vector<80x32xf32>
    %4 = tpu.matmul %3, %1, %cst {dimension_numbers = #tpu.dot_dimension_numbers<[1], [0], [0], [1], [0, 0, 1, 1], [], []>} : vector<80x96xf32>, vector<96x32xf32>, vector<80x32xf32> -> vector<80x32xf32>
    %c0_5 = arith.constant 0 : index
    %c0_6 = arith.constant 0 : index
    %c0_7 = arith.constant 0 : index
    %5 = vector.load %arg3[%c0_5, %c0_6, %c0_7] : memref<3x32x16xf32, #tpu.memory_space<vmem>>, vector<1x32x16xf32>
    %6 = vector.shape_cast %5 : vector<1x32x16xf32> to vector<32x16xf32>
    %cst_8 = arith.constant dense<0.000000e+00> : vector<80x16xf32>
    %7 = tpu.matmul %4, %6, %cst_8 {dimension_numbers = #tpu.dot_dimension_numbers<[1], [0], [0], [1], [0, 0, 1, 1], [], []>} : vector<80x32xf32>, vector<32x16xf32>, vector<80x16xf32> -> vector<80x16xf32>
    %c1 = arith.constant 1 : index
    %c0_9 = arith.constant 0 : index
    %c0_10 = arith.constant 0 : index
    %8 = vector.load %arg2[%c1, %c0_9, %c0_10] : memref<3x80x96xf32, #tpu.memory_space<vmem>>, vector<1x80x96xf32>
    %9 = vector.shape_cast %8 : vector<1x80x96xf32> to vector<80x96xf32>
    %cst_11 = arith.constant dense<0.000000e+00> : vector<80x32xf32>
    %10 = tpu.matmul %9, %1, %cst_11 {dimension_numbers = #tpu.dot_dimension_numbers<[1], [0], [0], [1], [0, 0, 1, 1], [], []>} : vector<80x96xf32>, vector<96x32xf32>, vector<80x32xf32> -> vector<80x32xf32>
    %c1_12 = arith.constant 1 : index
    %c0_13 = arith.constant 0 : index
    %c0_14 = arith.constant 0 : index
    %11 = vector.load %arg3[%c1_12, %c0_13, %c0_14] : memref<3x32x16xf32, #tpu.memory_space<vmem>>, vector<1x32x16xf32>
    %12 = vector.shape_cast %11 : vector<1x32x16xf32> to vector<32x16xf32>
    %cst_15 = arith.constant dense<0.000000e+00> : vector<80x16xf32>
    %13 = tpu.matmul %10, %12, %cst_15 {dimension_numbers = #tpu.dot_dimension_numbers<[1], [0], [0], [1], [0, 0, 1, 1], [], []>} : vector<80x32xf32>, vector<32x16xf32>, vector<80x16xf32> -> vector<80x16xf32>
    %14 = arith.addf %7, %13 : vector<80x16xf32>
    %c2 = arith.constant 2 : index
    %c0_16 = arith.constant 0 : index
    %c0_17 = arith.constant 0 : index
    %15 = vector.load %arg2[%c2, %c0_16, %c0_17] : memref<3x80x96xf32, #tpu.memory_space<vmem>>, vector<1x80x96xf32>
    %16 = vector.shape_cast %15 : vector<1x80x96xf32> to vector<80x96xf32>
    %cst_18 = arith.constant dense<0.000000e+00> : vector<80x32xf32>
    %17 = tpu.matmul %16, %1, %cst_18 {dimension_numbers = #tpu.dot_dimension_numbers<[1], [0], [0], [1], [0, 0, 1, 1], [], []>} : vector<80x96xf32>, vector<96x32xf32>, vector<80x32xf32> -> vector<80x32xf32>
    %c2_19 = arith.constant 2 : index
    %c0_20 = arith.constant 0 : index
    %c0_21 = arith.constant 0 : index
    %18 = vector.load %arg3[%c2_19, %c0_20, %c0_21] : memref<3x32x16xf32, #tpu.memory_space<vmem>>, vector<1x32x16xf32>
    %19 = vector.shape_cast %18 : vector<1x32x16xf32> to vector<32x16xf32>
    %cst_22 = arith.constant dense<0.000000e+00> : vector<80x16xf32>
    %20 = tpu.matmul %17, %19, %cst_22 {dimension_numbers = #tpu.dot_dimension_numbers<[1], [0], [0], [1], [0, 0, 1, 1], [], []>} : vector<80x32xf32>, vector<32x16xf32>, vector<80x16xf32> -> vector<80x16xf32>
    %21 = arith.addf %14, %20 : vector<80x16xf32>
    %c0_23 = arith.constant 0 : index
    %c0_24 = arith.constant 0 : index
    %22 = vector.load %arg4[%c0_23, %c0_24] : memref<80x1xf32, #tpu.memory_space<vmem>>, vector<80x1xf32>
    %23 = vector.broadcast %22 : vector<80x1xf32> to vector<80x16xf32>
    %24 = arith.addf %21, %23 : vector<80x16xf32>
    %cst_25 = arith.constant 0.000000e+00 : f32
    %25 = vector.broadcast %cst_25 : f32 to vector<80x16xf32>
    %26 = arith.maximumf %24, %25 : vector<80x16xf32>
    %c0_26 = arith.constant 0 : index
    %c0_27 = arith.constant 0 : index
    %c0_28 = arith.constant 0 : index
    %27 = vector.load %arg5[%c0_26, %c0_27, %c0_28] : memref<3x40x80xf32, #tpu.memory_space<vmem>>, vector<1x40x80xf32>
    %28 = vector.shape_cast %27 : vector<1x40x80xf32> to vector<40x80xf32>
    %cst_29 = arith.constant dense<0.000000e+00> : vector<40x16xf32>
    %29 = tpu.matmul %28, %26, %cst_29 {dimension_numbers = #tpu.dot_dimension_numbers<[1], [0], [0], [1], [0, 0, 1, 1], [], []>} : vector<40x80xf32>, vector<80x16xf32>, vector<40x16xf32> -> vector<40x16xf32>
    %c0_30 = arith.constant 0 : index
    %c0_31 = arith.constant 0 : index
    %c0_32 = arith.constant 0 : index
    %30 = vector.load %arg6[%c0_30, %c0_31, %c0_32] : memref<3x16x8xf32, #tpu.memory_space<vmem>>, vector<1x16x8xf32>
    %31 = vector.shape_cast %30 : vector<1x16x8xf32> to vector<16x8xf32>
    %cst_33 = arith.constant dense<0.000000e+00> : vector<40x8xf32>
    %32 = tpu.matmul %29, %31, %cst_33 {dimension_numbers = #tpu.dot_dimension_numbers<[1], [0], [0], [1], [0, 0, 1, 1], [], []>} : vector<40x16xf32>, vector<16x8xf32>, vector<40x8xf32> -> vector<40x8xf32>
    %c1_34 = arith.constant 1 : index
    %c0_35 = arith.constant 0 : index
    %c0_36 = arith.constant 0 : index
    %33 = vector.load %arg5[%c1_34, %c0_35, %c0_36] : memref<3x40x80xf32, #tpu.memory_space<vmem>>, vector<1x40x80xf32>
    %34 = vector.shape_cast %33 : vector<1x40x80xf32> to vector<40x80xf32>
    %cst_37 = arith.constant dense<0.000000e+00> : vector<40x16xf32>
    %35 = tpu.matmul %34, %26, %cst_37 {dimension_numbers = #tpu.dot_dimension_numbers<[1], [0], [0], [1], [0, 0, 1, 1], [], []>} : vector<40x80xf32>, vector<80x16xf32>, vector<40x16xf32> -> vector<40x16xf32>
    %c1_38 = arith.constant 1 : index
    %c0_39 = arith.constant 0 : index
    %c0_40 = arith.constant 0 : index
    %36 = vector.load %arg6[%c1_38, %c0_39, %c0_40] : memref<3x16x8xf32, #tpu.memory_space<vmem>>, vector<1x16x8xf32>
    %37 = vector.shape_cast %36 : vector<1x16x8xf32> to vector<16x8xf32>
    %cst_41 = arith.constant dense<0.000000e+00> : vector<40x8xf32>
    %38 = tpu.matmul %35, %37, %cst_41 {dimension_numbers = #tpu.dot_dimension_numbers<[1], [0], [0], [1], [0, 0, 1, 1], [], []>} : vector<40x16xf32>, vector<16x8xf32>, vector<40x8xf32> -> vector<40x8xf32>
    %39 = arith.addf %32, %38 : vector<40x8xf32>
    %c2_42 = arith.constant 2 : index
    %c0_43 = arith.constant 0 : index
    %c0_44 = arith.constant 0 : index
    %40 = vector.load %arg5[%c2_42, %c0_43, %c0_44] : memref<3x40x80xf32, #tpu.memory_space<vmem>>, vector<1x40x80xf32>
    %41 = vector.shape_cast %40 : vector<1x40x80xf32> to vector<40x80xf32>
    %cst_45 = arith.constant dense<0.000000e+00> : vector<40x16xf32>
    %42 = tpu.matmul %41, %26, %cst_45 {dimension_numbers = #tpu.dot_dimension_numbers<[1], [0], [0], [1], [0, 0, 1, 1], [], []>} : vector<40x80xf32>, vector<80x16xf32>, vector<40x16xf32> -> vector<40x16xf32>
    %c2_46 = arith.constant 2 : index
    %c0_47 = arith.constant 0 : index
    %c0_48 = arith.constant 0 : index
    %43 = vector.load %arg6[%c2_46, %c0_47, %c0_48] : memref<3x16x8xf32, #tpu.memory_space<vmem>>, vector<1x16x8xf32>
    %44 = vector.shape_cast %43 : vector<1x16x8xf32> to vector<16x8xf32>
    %cst_49 = arith.constant dense<0.000000e+00> : vector<40x8xf32>
    %45 = tpu.matmul %42, %44, %cst_49 {dimension_numbers = #tpu.dot_dimension_numbers<[1], [0], [0], [1], [0, 0, 1, 1], [], []>} : vector<40x16xf32>, vector<16x8xf32>, vector<40x8xf32> -> vector<40x8xf32>
    %46 = arith.addf %39, %45 : vector<40x8xf32>
    %c0_50 = arith.constant 0 : index
    %c0_51 = arith.constant 0 : index
    %47 = vector.load %arg7[%c0_50, %c0_51] : memref<40x1xf32, #tpu.memory_space<vmem>>, vector<40x1xf32>
    %48 = vector.broadcast %47 : vector<40x1xf32> to vector<40x8xf32>
    %49 = arith.addf %46, %48 : vector<40x8xf32>
    %cst_52 = arith.constant 0.000000e+00 : f32
    %50 = vector.broadcast %cst_52 : f32 to vector<40x8xf32>
    %51 = arith.maximumf %49, %50 : vector<40x8xf32>
    %c0_53 = arith.constant 0 : index
    %c0_54 = arith.constant 0 : index
    %c0_55 = arith.constant 0 : index
    %52 = vector.load %arg8[%c0_53, %c0_54, %c0_55] : memref<3x20x40xf32, #tpu.memory_space<vmem>>, vector<1x20x40xf32>
    %53 = vector.shape_cast %52 : vector<1x20x40xf32> to vector<20x40xf32>
    %cst_56 = arith.constant dense<0.000000e+00> : vector<20x8xf32>
    %54 = tpu.matmul %53, %51, %cst_56 {dimension_numbers = #tpu.dot_dimension_numbers<[1], [0], [0], [1], [0, 0, 1, 1], [], []>} : vector<20x40xf32>, vector<40x8xf32>, vector<20x8xf32> -> vector<20x8xf32>
    %c0_57 = arith.constant 0 : index
    %c0_58 = arith.constant 0 : index
    %c0_59 = arith.constant 0 : index
    %55 = vector.load %arg9[%c0_57, %c0_58, %c0_59] : memref<3x8x4xf32, #tpu.memory_space<vmem>>, vector<1x8x4xf32>
    %56 = vector.shape_cast %55 : vector<1x8x4xf32> to vector<8x4xf32>
    %cst_60 = arith.constant dense<0.000000e+00> : vector<20x4xf32>
    %57 = tpu.matmul %54, %56, %cst_60 {dimension_numbers = #tpu.dot_dimension_numbers<[1], [0], [0], [1], [0, 0, 1, 1], [], []>} : vector<20x8xf32>, vector<8x4xf32>, vector<20x4xf32> -> vector<20x4xf32>
    %c1_61 = arith.constant 1 : index
    %c0_62 = arith.constant 0 : index
    %c0_63 = arith.constant 0 : index
    %58 = vector.load %arg8[%c1_61, %c0_62, %c0_63] : memref<3x20x40xf32, #tpu.memory_space<vmem>>, vector<1x20x40xf32>
    %59 = vector.shape_cast %58 : vector<1x20x40xf32> to vector<20x40xf32>
    %cst_64 = arith.constant dense<0.000000e+00> : vector<20x8xf32>
    %60 = tpu.matmul %59, %51, %cst_64 {dimension_numbers = #tpu.dot_dimension_numbers<[1], [0], [0], [1], [0, 0, 1, 1], [], []>} : vector<20x40xf32>, vector<40x8xf32>, vector<20x8xf32> -> vector<20x8xf32>
    %c1_65 = arith.constant 1 : index
    %c0_66 = arith.constant 0 : index
    %c0_67 = arith.constant 0 : index
    %61 = vector.load %arg9[%c1_65, %c0_66, %c0_67] : memref<3x8x4xf32, #tpu.memory_space<vmem>>, vector<1x8x4xf32>
    %62 = vector.shape_cast %61 : vector<1x8x4xf32> to vector<8x4xf32>
    %cst_68 = arith.constant dense<0.000000e+00> : vector<20x4xf32>
    %63 = tpu.matmul %60, %62, %cst_68 {dimension_numbers = #tpu.dot_dimension_numbers<[1], [0], [0], [1], [0, 0, 1, 1], [], []>} : vector<20x8xf32>, vector<8x4xf32>, vector<20x4xf32> -> vector<20x4xf32>
    %64 = arith.addf %57, %63 : vector<20x4xf32>
    %c2_69 = arith.constant 2 : index
    %c0_70 = arith.constant 0 : index
    %c0_71 = arith.constant 0 : index
    %65 = vector.load %arg8[%c2_69, %c0_70, %c0_71] : memref<3x20x40xf32, #tpu.memory_space<vmem>>, vector<1x20x40xf32>
    %66 = vector.shape_cast %65 : vector<1x20x40xf32> to vector<20x40xf32>
    %cst_72 = arith.constant dense<0.000000e+00> : vector<20x8xf32>
    %67 = tpu.matmul %66, %51, %cst_72 {dimension_numbers = #tpu.dot_dimension_numbers<[1], [0], [0], [1], [0, 0, 1, 1], [], []>} : vector<20x40xf32>, vector<40x8xf32>, vector<20x8xf32> -> vector<20x8xf32>
    %c2_73 = arith.constant 2 : index
    %c0_74 = arith.constant 0 : index
    %c0_75 = arith.constant 0 : index
    %68 = vector.load %arg9[%c2_73, %c0_74, %c0_75] : memref<3x8x4xf32, #tpu.memory_space<vmem>>, vector<1x8x4xf32>
    %69 = vector.shape_cast %68 : vector<1x8x4xf32> to vector<8x4xf32>
    %cst_76 = arith.constant dense<0.000000e+00> : vector<20x4xf32>
    %70 = tpu.matmul %67, %69, %cst_76 {dimension_numbers = #tpu.dot_dimension_numbers<[1], [0], [0], [1], [0, 0, 1, 1], [], []>} : vector<20x8xf32>, vector<8x4xf32>, vector<20x4xf32> -> vector<20x4xf32>
    %71 = arith.addf %64, %70 : vector<20x4xf32>
    %c0_77 = arith.constant 0 : index
    %c0_78 = arith.constant 0 : index
    %72 = vector.load %arg10[%c0_77, %c0_78] : memref<20x1xf32, #tpu.memory_space<vmem>>, vector<20x1xf32>
    %73 = vector.broadcast %72 : vector<20x1xf32> to vector<20x4xf32>
    %74 = arith.addf %71, %73 : vector<20x4xf32>
    %cst_79 = arith.constant 0.000000e+00 : f32
    %75 = vector.broadcast %cst_79 : f32 to vector<20x4xf32>
    %76 = arith.maximumf %74, %75 : vector<20x4xf32>
    %c0_80 = arith.constant 0 : index
    %c0_81 = arith.constant 0 : index
    %c0_82 = arith.constant 0 : index
    %77 = vector.load %arg11[%c0_80, %c0_81, %c0_82] : memref<3x2x20xf32, #tpu.memory_space<vmem>>, vector<1x2x20xf32>
    %78 = vector.shape_cast %77 : vector<1x2x20xf32> to vector<2x20xf32>
    %cst_83 = arith.constant dense<0.000000e+00> : vector<2x4xf32>
    %79 = tpu.matmul %78, %76, %cst_83 {dimension_numbers = #tpu.dot_dimension_numbers<[1], [0], [0], [1], [0, 0, 1, 1], [], []>} : vector<2x20xf32>, vector<20x4xf32>, vector<2x4xf32> -> vector<2x4xf32>
    %c0_84 = arith.constant 0 : index
    %c0_85 = arith.constant 0 : index
    %c0_86 = arith.constant 0 : index
    %80 = vector.load %arg12[%c0_84, %c0_85, %c0_86] : memref<3x4x2xf32, #tpu.memory_space<vmem>>, vector<1x4x2xf32>
    %81 = vector.shape_cast %80 : vector<1x4x2xf32> to vector<4x2xf32>
    %cst_87 = arith.constant dense<0.000000e+00> : vector<2x2xf32>
    %82 = tpu.matmul %79, %81, %cst_87 {dimension_numbers = #tpu.dot_dimension_numbers<[1], [0], [0], [1], [0, 0, 1, 1], [], []>} : vector<2x4xf32>, vector<4x2xf32>, vector<2x2xf32> -> vector<2x2xf32>
    %c1_88 = arith.constant 1 : index
    %c0_89 = arith.constant 0 : index
    %c0_90 = arith.constant 0 : index
    %83 = vector.load %arg11[%c1_88, %c0_89, %c0_90] : memref<3x2x20xf32, #tpu.memory_space<vmem>>, vector<1x2x20xf32>
    %84 = vector.shape_cast %83 : vector<1x2x20xf32> to vector<2x20xf32>
    %cst_91 = arith.constant dense<0.000000e+00> : vector<2x4xf32>
    %85 = tpu.matmul %84, %76, %cst_91 {dimension_numbers = #tpu.dot_dimension_numbers<[1], [0], [0], [1], [0, 0, 1, 1], [], []>} : vector<2x20xf32>, vector<20x4xf32>, vector<2x4xf32> -> vector<2x4xf32>
    %c1_92 = arith.constant 1 : index
    %c0_93 = arith.constant 0 : index
    %c0_94 = arith.constant 0 : index
    %86 = vector.load %arg12[%c1_92, %c0_93, %c0_94] : memref<3x4x2xf32, #tpu.memory_space<vmem>>, vector<1x4x2xf32>
    %87 = vector.shape_cast %86 : vector<1x4x2xf32> to vector<4x2xf32>
    %cst_95 = arith.constant dense<0.000000e+00> : vector<2x2xf32>
    %88 = tpu.matmul %85, %87, %cst_95 {dimension_numbers = #tpu.dot_dimension_numbers<[1], [0], [0], [1], [0, 0, 1, 1], [], []>} : vector<2x4xf32>, vector<4x2xf32>, vector<2x2xf32> -> vector<2x2xf32>
    %89 = arith.addf %82, %88 : vector<2x2xf32>
    %c2_96 = arith.constant 2 : index
    %c0_97 = arith.constant 0 : index
    %c0_98 = arith.constant 0 : index
    %90 = vector.load %arg11[%c2_96, %c0_97, %c0_98] : memref<3x2x20xf32, #tpu.memory_space<vmem>>, vector<1x2x20xf32>
    %91 = vector.shape_cast %90 : vector<1x2x20xf32> to vector<2x20xf32>
    %cst_99 = arith.constant dense<0.000000e+00> : vector<2x4xf32>
    %92 = tpu.matmul %91, %76, %cst_99 {dimension_numbers = #tpu.dot_dimension_numbers<[1], [0], [0], [1], [0, 0, 1, 1], [], []>} : vector<2x20xf32>, vector<20x4xf32>, vector<2x4xf32> -> vector<2x4xf32>
    %c2_100 = arith.constant 2 : index
    %c0_101 = arith.constant 0 : index
    %c0_102 = arith.constant 0 : index
    %93 = vector.load %arg12[%c2_100, %c0_101, %c0_102] : memref<3x4x2xf32, #tpu.memory_space<vmem>>, vector<1x4x2xf32>
    %94 = vector.shape_cast %93 : vector<1x4x2xf32> to vector<4x2xf32>
    %cst_103 = arith.constant dense<0.000000e+00> : vector<2x2xf32>
    %95 = tpu.matmul %92, %94, %cst_103 {dimension_numbers = #tpu.dot_dimension_numbers<[1], [0], [0], [1], [0, 0, 1, 1], [], []>} : vector<2x4xf32>, vector<4x2xf32>, vector<2x2xf32> -> vector<2x2xf32>
    %96 = arith.addf %89, %95 : vector<2x2xf32>
    %c0_104 = arith.constant 0 : index
    %c0_105 = arith.constant 0 : index
    %97 = vector.load %arg13[%c0_104, %c0_105] : memref<2x1xf32, #tpu.memory_space<vmem>>, vector<2x1xf32>
    %98 = vector.broadcast %97 : vector<2x1xf32> to vector<2x2xf32>
    %99 = arith.addf %96, %98 : vector<2x2xf32>
    %cst_106 = arith.constant 0.000000e+00 : f32
    %100 = vector.broadcast %cst_106 : f32 to vector<2x2xf32>
    %101 = arith.maximumf %99, %100 : vector<2x2xf32>
    %c0_107 = arith.constant 0 : index
    %c0_108 = arith.constant 0 : index
    %102 = vector.load %arg14[%c0_107, %c0_108] : memref<4x128xf32, #tpu.memory_space<vmem>>, vector<4x128xf32>
    %c0_109 = arith.constant 0 : index
    %c0_110 = arith.constant 0 : index
    %103 = vector.load %arg15[%c0_109, %c0_110] : memref<1x128xf32, #tpu.memory_space<vmem>>, vector<1x128xf32>
    %104 = vector.extract_strided_slice %101 {offsets = [0, 0], sizes = [1, 2], strides = [1, 1]} : vector<2x2xf32> to vector<1x2xf32>
    %105 = vector.extract_strided_slice %102 {offsets = [0, 0], sizes = [2, 128], strides = [1, 1]} : vector<4x128xf32> to vector<2x128xf32>
    %cst_111 = arith.constant dense<0.000000e+00> : vector<1x128xf32>
    %106 = tpu.matmul %104, %105, %cst_111 {dimension_numbers = #tpu.dot_dimension_numbers<[1], [0], [0], [1], [0, 0, 1, 1], [], []>} : vector<1x2xf32>, vector<2x128xf32>, vector<1x128xf32> -> vector<1x128xf32>
    %107 = arith.addf %103, %106 : vector<1x128xf32>
    %108 = vector.extract_strided_slice %101 {offsets = [1, 0], sizes = [1, 2], strides = [1, 1]} : vector<2x2xf32> to vector<1x2xf32>
    %109 = vector.extract_strided_slice %102 {offsets = [2, 0], sizes = [2, 128], strides = [1, 1]} : vector<4x128xf32> to vector<2x128xf32>
    %cst_112 = arith.constant dense<0.000000e+00> : vector<1x128xf32>
    %110 = tpu.matmul %108, %109, %cst_112 {dimension_numbers = #tpu.dot_dimension_numbers<[1], [0], [0], [1], [0, 0, 1, 1], [], []>} : vector<1x2xf32>, vector<2x128xf32>, vector<1x128xf32> -> vector<1x128xf32>
    %111 = arith.addf %107, %110 : vector<1x128xf32>
    %c0_113 = arith.constant 0 : index
    %c0_114 = arith.constant 0 : index
    %112 = vector.load %arg16[%c0_113, %c0_114] : memref<128x128xf32, #tpu.memory_space<vmem>>, vector<128x128xf32>
    %cst_115 = arith.constant dense<0.000000e+00> : vector<1x128xf32>
    %113 = tpu.matmul %111, %112, %cst_115 {dimension_numbers = #tpu.dot_dimension_numbers<[1], [0], [0], [1], [0, 0, 1, 1], [], []>} : vector<1x128xf32>, vector<128x128xf32>, vector<1x128xf32> -> vector<1x128xf32>
    %c0_116 = arith.constant 0 : index
    %c0_117 = arith.constant 0 : index
    %114 = vector.load %arg17[%c0_116, %c0_117] : memref<1x128xf32, #tpu.memory_space<vmem>>, vector<1x128xf32>
    %115 = arith.addf %113, %114 : vector<1x128xf32>
    %c0_118 = arith.constant 0 : index
    %c0_119 = arith.constant 0 : index
    %c0_120 = arith.constant 0 : index
    %116 = vector.load %arg18[%c0_118, %c0_119, %c0_120] : memref<1x1x128xf32, #tpu.memory_space<vmem>>, vector<1x1x128xf32>
    %117 = vector.shape_cast %116 : vector<1x1x128xf32> to vector<1x128xf32>
    %118 = vector.shape_cast %115 : vector<1x128xf32> to vector<1x1x128xf32>
    tpu.vector_store %arg18[%c0_118, %c0_119, %c0_120], %118 {strides = array<i32>} : memref<1x1x128xf32, #tpu.memory_space<vmem>>, vector<1x1x128xf32>,
    return
  }
  func.func @transform_0(%arg0: i32) -> (i32, i32, i32) {
    %c0_i32 = arith.constant 0 : i32
    %c0_i32_0 = arith.constant 0 : i32
    %c0_i32_1 = arith.constant 0 : i32
    return %arg0, %c0_i32, %c0_i32_0 : i32, i32, i32
  }
  func.func @transform_1(%arg0: i32) -> (i32, i32, i32) {
    %c0_i32 = arith.constant 0 : i32
    %c0_i32_0 = arith.constant 0 : i32
    %c0_i32_1 = arith.constant 0 : i32
    %c0_i32_2 = arith.constant 0 : i32
    return %c0_i32, %c0_i32_0, %c0_i32_1 : i32, i32, i32
  }
  func.func @transform_2(%arg0: i32) -> (i32, i32, i32) {
    %c0_i32 = arith.constant 0 : i32
    %c0_i32_0 = arith.constant 0 : i32
    %c0_i32_1 = arith.constant 0 : i32
    %c0_i32_2 = arith.constant 0 : i32
    return %c0_i32, %c0_i32_0, %c0_i32_1 : i32, i32, i32
  }
  func.func @transform_3(%arg0: i32) -> (i32, i32) {
    %c0_i32 = arith.constant 0 : i32
    %c0_i32_0 = arith.constant 0 : i32
    %c0_i32_1 = arith.constant 0 : i32
    return %c0_i32, %c0_i32_0 : i32, i32
  }
  func.func @transform_4(%arg0: i32) -> (i32, i32, i32) {
    %c0_i32 = arith.constant 0 : i32
    %c0_i32_0 = arith.constant 0 : i32
    %c0_i32_1 = arith.constant 0 : i32
    %c0_i32_2 = arith.constant 0 : i32
    return %c0_i32, %c0_i32_0, %c0_i32_1 : i32, i32, i32
  }
  func.func @transform_5(%arg0: i32) -> (i32, i32, i32) {
    %c0_i32 = arith.constant 0 : i32
    %c0_i32_0 = arith.constant 0 : i32
    %c0_i32_1 = arith.constant 0 : i32
    %c0_i32_2 = arith.constant 0 : i32
    return %c0_i32, %c0_i32_0, %c0_i32_1 : i32, i32, i32
  }
  func.func @transform_6(%arg0: i32) -> (i32, i32) {
    %c0_i32 = arith.constant 0 : i32
    %c0_i32_0 = arith.constant 0 : i32
    %c0_i32_1 = arith.constant 0 : i32
    return %c0_i32, %c0_i32_0 : i32, i32
  }
  func.func @transform_7(%arg0: i32) -> (i32, i32, i32) {
    %c0_i32 = arith.constant 0 : i32
    %c0_i32_0 = arith.constant 0 : i32
    %c0_i32_1 = arith.constant 0 : i32
    %c0_i32_2 = arith.constant 0 : i32
    return %c0_i32, %c0_i32_0, %c0_i32_1 : i32, i32, i32
  }
  func.func @transform_8(%arg0: i32) -> (i32, i32, i32) {
    %c0_i32 = arith.constant 0 : i32
    %c0_i32_0 = arith.constant 0 : i32
    %c0_i32_1 = arith.constant 0 : i32
    %c0_i32_2 = arith.constant 0 : i32
    return %c0_i32, %c0_i32_0, %c0_i32_1 : i32, i32, i32
  }
  func.func @transform_9(%arg0: i32) -> (i32, i32) {
    %c0_i32 = arith.constant 0 : i32
    %c0_i32_0 = arith.constant 0 : i32
    %c0_i32_1 = arith.constant 0 : i32
    return %c0_i32, %c0_i32_0 : i32, i32
  }
  func.func @transform_10(%arg0: i32) -> (i32, i32, i32) {
    %c0_i32 = arith.constant 0 : i32
    %c0_i32_0 = arith.constant 0 : i32
    %c0_i32_1 = arith.constant 0 : i32
    %c0_i32_2 = arith.constant 0 : i32
    return %c0_i32, %c0_i32_0, %c0_i32_1 : i32, i32, i32
  }
  func.func @transform_11(%arg0: i32) -> (i32, i32, i32) {
    %c0_i32 = arith.constant 0 : i32
    %c0_i32_0 = arith.constant 0 : i32
    %c0_i32_1 = arith.constant 0 : i32
    %c0_i32_2 = arith.constant 0 : i32
    return %c0_i32, %c0_i32_0, %c0_i32_1 : i32, i32, i32
  }
  func.func @transform_12(%arg0: i32) -> (i32, i32) {
    %c0_i32 = arith.constant 0 : i32
    %c0_i32_0 = arith.constant 0 : i32
    %c0_i32_1 = arith.constant 0 : i32
    return %c0_i32, %c0_i32_0 : i32, i32
  }
  func.func @transform_13(%arg0: i32) -> (i32, i32) {
    %c0_i32 = arith.constant 0 : i32
    %c0_i32_0 = arith.constant 0 : i32
    %c0_i32_1 = arith.constant 0 : i32
    return %c0_i32, %c0_i32_0 : i32, i32
  }
  func.func @transform_14(%arg0: i32) -> (i32, i32) {
    %c0_i32 = arith.constant 0 : i32
    %c0_i32_0 = arith.constant 0 : i32
    %c0_i32_1 = arith.constant 0 : i32
    return %c0_i32, %c0_i32_0 : i32, i32
  }
  func.func @transform_15(%arg0: i32) -> (i32, i32) {
    %c0_i32 = arith.constant 0 : i32
    %c0_i32_0 = arith.constant 0 : i32
    %c0_i32_1 = arith.constant 0 : i32
    return %c0_i32, %c0_i32_0 : i32, i32
  }
  func.func @transform_16(%arg0: i32) -> (i32, i32) {
    %c0_i32 = arith.constant 0 : i32
    %c0_i32_0 = arith.constant 0 : i32
    %c0_i32_1 = arith.constant 0 : i32
    return %c0_i32, %c0_i32_0 : i32, i32
  }
  func.func @transform_17(%arg0: i32) -> (i32, i32, i32) {
    %c0_i32 = arith.constant 0 : i32
    %c0_i32_0 = arith.constant 0 : i32
    %c0_i32_1 = arith.constant 0 : i32
    return %arg0, %c0_i32, %c0_i32_0 : i32, i32, i32
  }
}

</mosaic_0001>

<bundles_post_ra>
// kernel: conv_model_forward.1
= control target key start
LH: loop header
LB: loop body
LE: loop exit
PB: predicated region body
PF: predicated region fallthrough
CT: control target
= control target key end

     0   :  { %s6103_s0 = inlined_call_operand.vmem [shape: f32[2,96,32], index: 0, kind: input, shape index: {}]   ;;  %s6104_s1 = inlined_call_operand.vmem [shape: f32[3,80,96], index: 1, kind: input, shape index: {}]   ;;  %s6105_s2 = inlined_call_operand.vmem [shape: f32[3,32,16], index: 2, kind: input, shape index: {}]   ;;  %s6106_s3 = inlined_call_operand.vmem [shape: f32[80,1], index: 3, kind: input, shape index: {}]   ;;  %s6107_s4 = inlined_call_operand.hbm [shape: f32[3,40,80], index: 4, kind: input, shape index: {}]   ;;  %s6108_s5 = inlined_call_operand.vmem [shape: f32[3,16,8], index: 5, kind: input, shape index: {}]   ;;  %s6109_s6 = inlined_call_operand.vmem [shape: f32[40,1], index: 6, kind: input, shape index: {}]   ;;  %s6110_s7 = inlined_call_operand.hbm [shape: f32[3,20,40], index: 7, kind: input, shape index: {}]   ;;  %s6111_s8 = inlined_call_operand.vmem [shape: f32[3,8,4], index: 8, kind: input, shape index: {}]   ;;  %s6112_s9 = inlined_call_operand.vmem [shape: f32[20,1], index: 9, kind: input, shape index: {}]   ;;  %s6113_s10 = inlined_call_operand.vmem [shape: f32[3,2,20], index: 10, kind: input, shape index: {}]   ;;  %s6114_s11 = inlined_call_operand.vmem [shape: f32[3,4,2], index: 11, kind: input, shape index: {}]   ;;  %s6115_s12 = inlined_call_operand.vmem [shape: f32[2,1], index: 12, kind: input, shape index: {}]   ;;  %s6116_s13 = inlined_call_operand.hbm [shape: f32[4,128], index: 13, kind: input, shape index: {}]   ;;  %s6117_s14 = inlined_call_operand.hbm [shape: f32[1,128], index: 14, kind: input, shape index: {}]   ;;  %s6118_s15 = inlined_call_operand.hbm [shape: f32[128,128], index: 15, kind: input, shape index: {}]   ;;  %s6119_s16 = inlined_call_operand.hbm [shape: f32[1,128], index: 16, kind: input, shape index: {}]   ;;  %s6120_s17 = inlined_call_operand.vmem [shape: f32[2,1,128], index: 17, kind: output, shape index: {}]  }
   0x1   :  { %6128 = sst [smem:[#allocation17_spill]] %s6103_s0 }
   0x2   :  { %6129 = sst [smem:[#allocation18_spill]] %s6104_s1 }
   0x3   :  { %6130 = sst [smem:[#allocation19_spill]] %s6111_s8 }
   0x4   :  { %6131 = sst [smem:[#allocation20_spill]] %s6113_s10 }
   0x5   :  { %6132 = sst [smem:[#allocation21_spill]] %s6114_s11 }
   0x6   :  { %6133 = sst [smem:[#allocation22_spill]] %s6120_s17 }
   0x7   :  { %22 = vsyncpa [#allocation3], 0 }
   0x8   :  { %23 = vsyncpa [#allocation5], 0 }
   0x9   :  { %24 = vsyncpa [#allocation8], 0 }
   0xa   :  { %25 = vsyncpa [#allocation11], 0  ;;  %s5305_s24 = smov 0  }
   0xb LB: > { %6134 = sst [smem:[#allocation16_spill]] %s5201_s24  ;;  %s5311_s25 = sadd.s32 4294967295, %s5201_s24   ;;  %s5201_s24 = sphi %s5305_s24, %s31_s24  }
   0xc   : > { %p3755_p0 = scmp.ge.s32.totalorder %s5201_s24, 1  ;;  %p424_p1 = scmp.lt.s32.totalorder %s5201_s24, 3 }
   0xd   : > { %p6126_p2 = scmp.eq.s32.totalorder %s5311_s25, 0  ;;  %s5203_s27 = smov [#allocation4]  }
   0xe   : > { %p5316_p3 = pnand %p3755_p0, %p424_p1  ;;  %s464_s28 = sshll.u32 %s5203_s27, 4  ;;  %s5320_s28 = int_to_ptr.vmem [resolvable:$true] %s464_s28 }
   0xf   : > { %s5204_s29 = smov [#allocation7]   ;;  %s5205_s18 = smov [#allocation2]  }
  0x10   : > { %s6135_s26 = scalar_select %p5316_p3, 1, 0 }
  0x11   : > { %p4958_p4 = pneg %p5316_p3  ;;  %s504_s0 = sshll.u32 %s5204_s29, 4  ;;  %s5324_s0 = int_to_ptr.vmem [resolvable:$true] %s504_s0 }
  0x12   : > { %s445_s19 = sshll.u32 %s5205_s18, 4  ;;  %s5206_s1 = smov [#allocation6]   ;;  %s5332_s19 = int_to_ptr.vmem [resolvable:$true] %s445_s19 }
  0x13   : > { %p5328_p5 = pnand %p6126_p2, %p4958_p4  ;;  %s5334_s20 = sshll.u32 %s5206_s1, 4  ;;  %s494_s20 = int_to_ptr.vmem [resolvable:$true] %s5334_s20 }
  0x14   : > { %s5011_s23 = scalar_lea.hbm %s6110_s7, 1152 }
  0x15   : > { %p5012_p6 = scmp.ne.s32.totalorder %s6110_s7, %s5011_s23  ;;  %p5344_p7 = pneg %p5328_p5 }
  0x16   : > { %p5018_p10 = scmp.lt.u32.totalorder %s5011_s23, %s6110_s7 }
  0x17   : > { %p5014_p8 = pnand %p5344_p7, %p5012_p6 }
  0x19   : > { %p5015_p9 = pneg %p5014_p8 }
  0x1b   : > { %p5020_p11 = pnand %p5018_p10, %p5015_p9 }
  0x1d   : > { %5023 = shalt.err (!%p5020_p11)
}
  0x1e   : > { %s5024_s21 = scalar_lea.vmem %s5320_s28, 1152  ;;  %p5032_p1 = scmp.lt.s32.totalorder %s5320_s28, %s5320_s28 }
  0x1f   : > { %p5025_p12 = scmp.ne.s32.totalorder %s5320_s28, %s5024_s21  ;;  %p5033_p4 = scmp.lt.s32.totalorder %s5024_s21, %s5024_s21 }
  0x21   : > { %p5027_p13 = pnand %p5025_p12, %p5344_p7  ;;  %p5034_p6 = por %p5033_p4, %p5032_p1 }
  0x23   : > { %p5028_p0 = pneg %p5027_p13 }
  0x25   : > { %p5035_p8 = pnand %p5034_p6, %p5028_p0 }
  0x27   : > { %5038 = shalt.err (!%p5035_p8)
}
  0x28   : > { %s5207_s22 = smov 128   ;;  %s5208_s23 = smov 8  }
  0x29   : > { %4964 = dma.hbm_to_vmem [thread:$0]  (!%p5328_p5), %s6110_s7, 1152, %s5320_s28, [#allocation5], %s5207_s22, %s5207_s22, %s5208_s23  }
  0x2a   : > { %s5039_s21 = scalar_lea.hbm %s6117_s14, 16 }
  0x2b   : > { %p5040_p9 = scmp.ne.s32.totalorder %s6117_s14, %s5039_s21  ;;  %p5046_p12 = scmp.lt.u32.totalorder %s5039_s21, %s6117_s14 }
  0x2d   : > { %p5042_p10 = pnand %p5040_p9, %p5344_p7 }
  0x2f   : > { %p5043_p11 = pneg %p5042_p10 }
  0x31   : > { %p5048_p13 = pnand %p5046_p12, %p5043_p11 }
  0x33   : > { %5051 = shalt.err (!%p5048_p13)
}
  0x34   : > { %s5052_s28 = scalar_lea.vmem %s5324_s0, 16  ;;  %s5059_s11 = scalar_lea.vmem %s5324_s0, 32 }
  0x35   : > { %p5053_p0 = scmp.ne.s32.totalorder %s5324_s0, %s5052_s28  ;;  %p5060_p6 = scmp.lt.s32.totalorder %s5324_s0, %s5324_s0 }
  0x36   : > { %p5061_p8 = scmp.lt.s32.totalorder %s5059_s11, %s5052_s28 }
  0x37   : > { %p5055_p1 = pnand %p5053_p0, %p5344_p7 }
  0x38   : > { %p5062_p9 = por %p5061_p8, %p5060_p6 }
  0x39   : > { %p5056_p4 = pneg %p5055_p1 }
  0x3b   : > { %p5063_p10 = pnand %p5062_p9, %p5056_p4 }
  0x3d   : > { %5066 = shalt.err (!%p5063_p10)
}
  0x3e   : > { %4970 = dma.hbm_to_vmem [thread:$0]  (!%p5328_p5), %s6117_s14, 16, %s5324_s0, [#allocation8]  }
  0x3f   : > { %s5067_s29 = scalar_lea.hbm %s6107_s4, 1920 }
  0x40   : > { %p5068_p11 = scmp.ne.s32.totalorder %s6107_s4, %s5067_s29  ;;  %p5074_p0 = scmp.lt.u32.totalorder %s5067_s29, %s6107_s4 }
  0x42   : > { %p5070_p12 = pnand %p5068_p11, %p5344_p7 }
  0x44   : > { %p5071_p13 = pneg %p5070_p12 }
  0x46   : > { %p5076_p1 = pnand %p5074_p0, %p5071_p13 }
  0x48   : > { %5079 = shalt.err (!%p5076_p1)
}
  0x49   : > { %s5080_s0 = scalar_lea.vmem %s5332_s19, 1920  ;;  %p5088_p9 = scmp.lt.s32.totalorder %s5332_s19, %s5332_s19 }
  0x4a   : > { %p5081_p4 = scmp.ne.s32.totalorder %s5332_s19, %s5080_s0  ;;  %p5089_p10 = scmp.lt.s32.totalorder %s5080_s0, %s5080_s0 }
  0x4c   : > { %p5083_p6 = pnand %p5081_p4, %p5344_p7  ;;  %p5090_p11 = por %p5089_p10, %p5088_p9 }
  0x4e   : > { %p5084_p8 = pneg %p5083_p6 }
  0x50   : > { %p5091_p12 = pnand %p5090_p11, %p5084_p8 }
  0x52   : > { %5094 = shalt.err (!%p5091_p12)
}
  0x53   : > { %4961 = dma.hbm_to_vmem [thread:$0]  (!%p5328_p5), %s6107_s4, 1920, %s5332_s19, [#allocation3], %s5207_s22, %s5207_s22, %s5208_s23  }
  0x54   : > { %s5095_s27 = scalar_lea.hbm %s6116_s13, 64 }
  0x55   : > { %p5096_p13 = scmp.ne.s32.totalorder %s6116_s13, %s5095_s27  ;;  %p5102_p4 = scmp.lt.u32.totalorder %s5095_s27, %s6116_s13 }
  0x57   : > { %p5098_p0 = pnand %p5096_p13, %p5344_p7 }
  0x59   : > { %p5099_p1 = pneg %p5098_p0 }
  0x5b   : > { %p5104_p6 = pnand %p5102_p4, %p5099_p1 }
  0x5d   : > { %5107 = shalt.err (!%p5104_p6)
}
  0x5e   : > { %s5108_s28 = scalar_lea.vmem %s494_s20, 64  ;;  %p5116_p11 = scmp.lt.s32.totalorder %s494_s20, %s494_s20 }
  0x5f   : > { %p5109_p8 = scmp.ne.s32.totalorder %s494_s20, %s5108_s28  ;;  %p5117_p12 = scmp.lt.s32.totalorder %s5108_s28, %s5108_s28 }
  0x61   : > { %p5111_p9 = pnand %p5109_p8, %p5344_p7  ;;  %p5118_p2 = por %p5117_p12, %p5116_p11 }
  0x63   : > { %p5112_p10 = pneg %p5111_p9 }
  0x65   : > { %p5119_p3 = pnand %p5118_p2, %p5112_p10 }
  0x67   : > { %5122 = shalt.err (!%p5119_p3)
}
  0x68   : > { %4967 = dma.hbm_to_vmem [thread:$0]  (!%p5328_p5), %s6116_s13, 64, %s494_s20, [#allocation5]  }
  0x69   : > { %s5209_s11 = smov [#allocation9]   ;;  %s5210_s10 = smov [#allocation10]  }
  0x6a   : > { %s514_s8 = sshll.u32 %s5209_s11, 4  ;;  %s528_s17 = sshll.u32 %s5210_s10, 4  ;;  %s515_s8 = int_to_ptr.vmem [resolvable:$true] %s514_s8  ;;  %s529_s17 = int_to_ptr.vmem [resolvable:$true] %s528_s17 }
  0x6b   : > { %s5123_s18 = scalar_lea.hbm %s6118_s15, 2048 }
  0x6c   : > { %p5124_p2 = scmp.ne.s32.totalorder %s6118_s15, %s5123_s18  ;;  %p5130_p0 = scmp.lt.u32.totalorder %s5123_s18, %s6118_s15 }
  0x6e   : > { %p5126_p3 = pnand %p5124_p2, %p5344_p7 }
  0x70   : > { %p5127_p13 = pneg %p5126_p3 }
  0x72   : > { %p5132_p1 = pnand %p5130_p0, %p5127_p13 }
  0x74   : > { %5135 = shalt.err (!%p5132_p1)
}
  0x75   : > { %s5136_s20 = scalar_lea.vmem %s515_s8, 2048  ;;  %p5144_p9 = scmp.lt.s32.totalorder %s515_s8, %s515_s8 }
  0x76   : > { %p5137_p4 = scmp.ne.s32.totalorder %s515_s8, %s5136_s20  ;;  %p5145_p10 = scmp.lt.s32.totalorder %s5136_s20, %s5136_s20 }
  0x78   : > { %p5139_p6 = pnand %p5137_p4, %p5344_p7  ;;  %p5146_p11 = por %p5145_p10, %p5144_p9 }
  0x7a   : > { %p5140_p8 = pneg %p5139_p6 }
  0x7c   : > { %p5147_p12 = pnand %p5146_p11, %p5140_p8 }
  0x7e   : > { %5150 = shalt.err (!%p5147_p12)
}
  0x7f   : > { %4973 = dma.hbm_to_vmem [thread:$0]  (!%p5328_p5), %s6118_s15, 2048, %s515_s8, [#allocation8], %s5207_s22, %s5207_s22, %s5208_s23  }
  0x80   : > { %s5151_s29 = scalar_lea.hbm %s6119_s16, 16 }
  0x81   : > { %p5152_p2 = scmp.ne.s32.totalorder %s6119_s16, %s5151_s29  ;;  %p5158_p0 = scmp.lt.u32.totalorder %s5151_s29, %s6119_s16 }
  0x83   : > { %p5154_p3 = pnand %p5152_p2, %p5344_p7 }
  0x85   : > { %p5155_p13 = pneg %p5154_p3 }
  0x87   : > { %p5160_p1 = pnand %p5158_p0, %p5155_p13 }
  0x89   : > { %5163 = shalt.err (!%p5160_p1)
}
  0x8a   : > { %s5164_s19 = scalar_lea.vmem %s529_s17, 16  ;;  %s5171_s22 = scalar_lea.vmem %s529_s17, 32 }
  0x8b   : > { %p5165_p4 = scmp.ne.s32.totalorder %s529_s17, %s5164_s19  ;;  %p5172_p9 = scmp.lt.s32.totalorder %s529_s17, %s529_s17 }
  0x8c   : > { %p5173_p10 = scmp.lt.s32.totalorder %s5171_s22, %s5164_s19 }
  0x8d   : > { %p5167_p6 = pnand %p5165_p4, %p5344_p7 }
  0x8e   : > { %p5174_p11 = por %p5173_p10, %p5172_p9 }
  0x8f   : > { %p5168_p8 = pneg %p5167_p6 }
  0x91   : > { %p5175_p12 = pnand %p5174_p11, %p5168_p8 }
  0x93   : > { %5178 = shalt.err (!%p5175_p12)
}
  0x94   : > { %4976 = dma.hbm_to_vmem [thread:$0]  (!%p5328_p5), %s6119_s16, 16, %s529_s17, [#allocation11]  }
  0x95   : > { %p6138_p2 = scmp.ne.s32.totalorder %s6135_s26, 0 }
  0x96   : > { %p6139_p3 = scmp.eq.s32.totalorder (!%p6138_p2), %s5311_s25, 0 }
  0x97   : > { %549 = sbr.rel (%p6138_p2) target bundleno = 2948 (0xb84), region = 88 }
  0x9e   : > { %5184 = dma.done.wait (%p6139_p3), [#allocation3], 1920   ;;  %p6140_p7 = pmov %p6139_p3 }
  0x9f   : > { %p6141_p13 = pmov %p6139_p3 }
  0xa0   : > { %5186 = vsyncadd (%p6140_p7), [#allocation3], 4294965376 }
  0xa1   : > { %5188 = dma.done.wait (%p6141_p13), [#allocation5], 1216   ;;  %p6142_p0 = pmov %p6139_p3 }
  0xa3   : > { %5190 = vsyncadd (%p6142_p0), [#allocation5], 4294966080  ;;  %p6143_p1 = pmov %p6142_p0 }
  0xa4   : > { %p6144_p5 = pmov %p6142_p0 }
  0xa5   : > { %5192 = dma.done.wait (%p6143_p1), [#allocation8], 2064  }
  0xa6   : > { %5194 = vsyncadd (%p6144_p5), [#allocation8], 4294965232  ;;  %p6145_p4 = pmov %p6142_p0 }
  0xa7   : > { %p6146_p6 = pmov %p6142_p0 }
  0xa8   : > { %5196 = dma.done.wait (%p6145_p4), [#allocation11], 16  }
  0xa9   : > { %5198 = vsyncadd (%p6146_p6), [#allocation11], 4294967280  ;;  %p619_p8 = scmp.lt.s32.totalorder %s5311_s25, 1  ;;  %s6147_s17 = sld [smem:[#allocation17_spill]]  ;;  %vm649_vm0 = vcmask 785408   ;;  %v3801_v20 = vld [vmem:[%s6105_s2 + $0x20] sm:$0xff] }
  0xaa   : > { %s6148_s10 = sld [smem:[#allocation18_spill]]  ;;  %v3802_v21 = vld [vmem:[%s6105_s2 + $0x28] sm:$0xff]  ;;  %v3803_v27 = vld [vmem:[%s6105_s2 + $0x30] sm:$0xff]  ;;  %v3804_v28 = vld [vmem:[%s6105_s2 + $0x38] sm:$0xff]  ;;  %v5211_v59 = vmov 0   ;;  %vm960_vm1 = vcmask 261120  }
  0xab   : > { %s6155_s25 = smov (!%p619_p8, %s5311_s25), 1  ;;  %v4757_v22 = vpack.c.bf16 %v3802_v21, %v3801_v20  ;;  %v4761_v33 = vpack.c.bf16 %v3804_v28, %v3803_v27  ;;  %v795_v54 = vld [vmem:[%s6105_s2] sm:$0xff]  ;;  %v796_v55 = vld [vmem:[%s6105_s2 + $0x8] sm:$0xff]  ;;  %v1569_v58 = vld [vmem:[%s6106_s3 + $0x10] sm:$0xff]  ;;  %5009 = vset.pattern.permute.xlu0 %v5211_v59  ;;  %5010 = vset.pattern.permute.xlu1 %v5211_v59  ;;  %vm5213_vm2 = vmmov 0   ;;  %vm1652_vm3 = vcmask 654336  }
  0xac   : > { %s4933_s24 = smul.u32 96, %s6155_s25  ;;  %v4765_v56 = vpack.c.bf16 %v796_v55, %v795_v54  ;;  %v1567_v57 = vld [vmem:[%s6106_s3] sm:$0xff]  ;;  %1589 = vperm.xlu1 %5010, %v1569_v58   ;;  %v1568_v60 = vld [vmem:[%s6106_s3 + $0x8] sm:$0xff]  ;;  %v1570_v61 = vld [vmem:[%s6106_s3 + $0x18] sm:$0xff]  ;;  %vm1874_vm4 = vcmask 130048   ;;  %vm2352_vm5 = vcmask 326656  }
  0xad   : > { %1579 = vperm.xlu0 %5009, %v1567_v57   ;;  %v1571_v62 = vld [vmem:[%s6106_s3 + $0x20] sm:$0xff]  ;;  %v1572_v63 = vld [vmem:[%s6106_s3 + $0x28] sm:$0xff]  ;;  %s6149_s0 = sld [smem:[#allocation19_spill]]  ;;  %vm2538_vm6 = vcmask 64512   ;;  %vm2933_vm7 = vcmask 1043456   ;;  %vm2929_vm8 = vcmask 162816  }
  0xae   : > { %v3845_v20 = vld [vmem:[%s6105_s2 + $0x40] sm:$0xff]  ;;  %v3846_v21 = vld [vmem:[%s6105_s2 + $0x48] sm:$0xff]  ;;  %s6150_s28 = sld [smem:[#allocation20_spill]]  ;;  %s6151_s30 = sld [smem:[#allocation21_spill]]  ;;  %vm3085_vm9 = vcmask 31744   ;;  %vm3406_vm10 = vcmask 1041408  }
  0xaf   : > { %s5502_s20 = scalar_lea.vmem %s6147_s17, %s4933_s24  ;;  %vm3402_vm11 = vcmask 15360   ;;  %s6152_s1 = sld [smem:[#allocation22_spill]] }
  0xb0   : > { %v627_v0 = vld [vmem:[%s5502_s20] sm:$0xff]  ;;  %v628_v1 = vld [vmem:[%s5502_s20 + $0x8] sm:$0xff]  ;;  %v629_v2 = vld [vmem:[%s5502_s20 + $0x10] sm:$0xff]  ;;  %1594 = vperm.xlu1 %5010, %v1570_v61  }
  0xb1   : > { %v4709_v3 = vpack.c.bf16 %v628_v1, %v627_v0  ;;  %v630_v4 = vld [vmem:[%s5502_s20 + $0x18] sm:$0xff]  ;;  %v631_v6 = vld [vmem:[%s5502_s20 + $0x20] sm:$0xff]  ;;  %v632_v7 = vld [vmem:[%s5502_s20 + $0x28] sm:$0xff]  ;;  %1584 = vperm.xlu0 %5009, %v1568_v60  }
  0xb2   : > { %v5508_v5 = vpack.c.bf16 %v630_v4, %v629_v2  ;;  %v3781_v8 = vld [vmem:[%s6148_s10 + $0x50] sm:$0xff]  ;;  %v5516_v9 = vpack.c.bf16 %v632_v7, %v631_v6  ;;  %v634_v11 = vld [vmem:[%s5502_s20 + $0x38] sm:$0xff]  ;;  %v639_v12 = vld [vmem:[%s6148_s10] sm:$0xff] }
  0xb3   : > { %4734 = vmatprep.subr.bf16.mxu1 %v4709_v3  ;;  %4710 = vmatprep.subr.bf16.mxu0 %v4709_v3  ;;  %v633_v10 = vld [vmem:[%s5502_s20 + $0x30] sm:$0xff]  ;;  %v635_v14 = vld [vmem:[%s5502_s20 + $0x40] sm:$0xff]  ;;  %v636_v15 = vld [vmem:[%s5502_s20 + $0x48] sm:$0xff] }
  0xb4   : > { %4736 = vmatpush3.bf16.msra.mxu1 %v4709_v3  ;;  %4712 = vmatpush3.bf16.msra.mxu0 %v4709_v3  ;;  %v5528_v13 = vpack.c.bf16 %v634_v11, %v633_v10  ;;  %v5537_v16 = vpack.c.bf16 %v636_v15, %v635_v14  ;;  %v637_v17 = vld [vmem:[%s5502_s20 + $0x50] sm:$0xff]  ;;  %v638_v18 = vld [vmem:[%s5502_s20 + $0x58] sm:$0xff]  ;;  %v640_v24 = vld [vmem:[%s6148_s10 + $0x8] sm:$0xff] }
  0xb5   : > { %4738 = vmatprep.subr.bf16.mxu1 %v5508_v5  ;;  %4714 = vmatprep.subr.bf16.mxu0 %v5508_v5  ;;  %v5545_v19 = vpack.c.bf16 %v638_v18, %v637_v17  ;;  %v3782_v23 = vld [vmem:[%s6148_s10 + $0x58] sm:$0xff]  ;;  %v3783_v25 = vld [vmem:[%s6148_s10 + $0x60] sm:$0xff]  ;;  %v641_v26 = vld [vmem:[%s6148_s10 + $0x10] sm:$0xff]  ;;  %s626_s21 = scalar_lea.vmem %s6152_s1, %s6155_s25 }
  0xb6   : > { %4247 = vmatprep.mubr.msk.f32.mxu1 %vm649_vm0, %v3781_v8  ;;  %4208 = vmatprep.mubr.msk.f32.mxu0 %vm649_vm0, %v639_v12  ;;  %v3784_v29 = vld [vmem:[%s6148_s10 + $0x68] sm:$0xff]  ;;  %v642_v30 = vld [vmem:[%s6148_s10 + $0x18] sm:$0xff]  ;;  %v3785_v31 = vld [vmem:[%s6148_s10 + $0x70] sm:$0xff] }
  0xb7   : > { %v643_v32 = vld [vmem:[%s6148_s10 + $0x20] sm:$0xff]  ;;  %v3786_v34 = vld [vmem:[%s6148_s10 + $0x78] sm:$0xff]  ;;  %v644_v35 = vld [vmem:[%s6148_s10 + $0x28] sm:$0xff]  ;;  %1599 = vperm.xlu0 %5009, %v1571_v62   ;;  %1604 = vperm.xlu1 %5010, %v1572_v63  }
  0xb8   : > { %4740 = vmatpush3.bf16.msra.mxu1 %v5508_v5  ;;  %4716 = vmatpush3.bf16.msra.mxu0 %v5508_v5  ;;  %v3787_v36 = vld [vmem:[%s6148_s10 + $0x80] sm:$0xff]  ;;  %v645_v37 = vld [vmem:[%s6148_s10 + $0x30] sm:$0xff]  ;;  %v3788_v38 = vld [vmem:[%s6148_s10 + $0x88] sm:$0xff] }
  0xb9   : > { %4742 = vmatprep.subr.bf16.mxu1 %v5516_v9  ;;  %4718 = vmatprep.subr.bf16.mxu0 %v5516_v9  ;;  %v646_v39 = vld [vmem:[%s6148_s10 + $0x38] sm:$0xff]  ;;  %v3789_v40 = vld [vmem:[%s6148_s10 + $0x90] sm:$0xff]  ;;  %v647_v41 = vld [vmem:[%s6148_s10 + $0x40] sm:$0xff] }
  0xba   : > { %v3790_v42 = vld [vmem:[%s6148_s10 + $0x98] sm:$0xff]  ;;  %v648_v43 = vld [vmem:[%s6148_s10 + $0x48] sm:$0xff]  ;;  %v3825_v44 = vld [vmem:[%s6148_s10 + $0xa0] sm:$0xff] }
  0xbb   : > { %v3826_v45 = vld [vmem:[%s6148_s10 + $0xa8] sm:$0xff]  ;;  %v3827_v46 = vld [vmem:[%s6148_s10 + $0xb0] sm:$0xff]  ;;  %v3828_v47 = vld [vmem:[%s6148_s10 + $0xb8] sm:$0xff] }
  0xbc   : > { %4744 = vmatpush3.bf16.msra.mxu1 %v5516_v9  ;;  %4720 = vmatpush3.bf16.msra.mxu0 %v5516_v9  ;;  %v3829_v48 = vld [vmem:[%s6148_s10 + $0xc0] sm:$0xff]  ;;  %v3830_v49 = vld [vmem:[%s6148_s10 + $0xc8] sm:$0xff]  ;;  %v3831_v50 = vld [vmem:[%s6148_s10 + $0xd0] sm:$0xff] }
  0xbd   : > { %4746 = vmatprep.subr.bf16.mxu1 %v5528_v13  ;;  %4722 = vmatprep.subr.bf16.mxu0 %v5528_v13  ;;  %v3832_v51 = vld [vmem:[%s6148_s10 + $0xd8] sm:$0xff]  ;;  %v3833_v52 = vld [vmem:[%s6148_s10 + $0xe0] sm:$0xff]  ;;  %v3834_v53 = vld [vmem:[%s6148_s10 + $0xe8] sm:$0xff] }
  0xbe   : > { %v1573_v0 = vld [vmem:[%s6106_s3 + $0x30] sm:$0xff]  ;;  %v1574_v1 = vld [vmem:[%s6106_s3 + $0x38] sm:$0xff]  ;;  %v1575_v2 = vld [vmem:[%s6106_s3 + $0x40] sm:$0xff] }
  0xbf   : > { %1609 = vperm.xlu0 %5009, %v1573_v0   ;;  %1614 = vperm.xlu1 %5010, %v1574_v1   ;;  %v2309_v4 = vld [vmem:[%s6109_s6] sm:$0xff]  ;;  %v2311_v6 = vld [vmem:[%s6109_s6 + $0x10] sm:$0xff]  ;;  %v2312_v7 = vld [vmem:[%s6109_s6 + $0x18] sm:$0xff] }
  0xc0   : > { %4748 = vmatpush3.bf16.msra.mxu1 %v5528_v13  ;;  %4724 = vmatpush3.bf16.msra.mxu0 %v5528_v13  ;;  %v2313_v8 = vld [vmem:[%s6109_s6 + $0x20] sm:$0xff]  ;;  %v2905_v10 = vld [vmem:[%s6112_s9 + $0x8] sm:$0xff]  ;;  %v2906_v11 = vld [vmem:[%s6112_s9 + $0x10] sm:$0xf] }
  0xc1   : > { %4750 = vmatprep.subr.bf16.mxu1 %v5537_v16  ;;  %4726 = vmatprep.subr.bf16.mxu0 %v5537_v16  ;;  %v3392_v12 = vld [vmem:[%s6115_s12] sm:$0x3]  ;;  %v798_v14 = vld [vmem:[%s6105_s2 + $0x18] sm:$0xff] }
  0xc3   : > { %1619 = vperm.xlu0 %5009, %v1575_v2  }
  0xc4   : > { %4752 = vmatpush3.bf16.msra.mxu1 %v5537_v16  ;;  %4728 = vmatpush3.bf16.msra.mxu0 %v5537_v16 }
  0xc5   : > { %4754 = vmatprep.subr.bf16.mxu1 %v5545_v19  ;;  %4730 = vmatprep.subr.bf16.mxu0 %v5545_v19 }
  0xc7   : > { %2316 = vperm.xlu0 %5009, %v2309_v4  }
  0xc8   : > { %4756 = vmatpush3.bf16.msra.mxu1 %v5545_v19  ;;  %4732 = vmatpush3.bf16.msra.mxu0 %v5545_v19 }
  0xc9   : > { %4774 = vmatprep.subr.bf16.mxu1 %v4709_v3  ;;  %4758 = vmatprep.subr.bf16.mxu0 %v4757_v22 }
  0xcb   : > { %4248 = vmatmul.mubr.msk.f32.vlgmr.msra.gmra.mrb[0].mxu1 %vm649_vm0, %v3782_v23  ;;  %4209 = vmatmul.mubr.msk.f32.vlgmr.msra.gmra.mrb[0].mxu0 %vm649_vm0, %v640_v24 }
  0xcc   : > { %4250 = vmatprep.mubr.msk.f32.mxu1 %vm649_vm0, %v3783_v25  ;;  %4776 = vmatpush3.bf16.msra.mxu1 %v4709_v3  ;;  %v1576_v3 = vld [vmem:[%s6106_s3 + $0x48] sm:$0xff] }
  0xcd   : > { %4778 = vmatprep.subr.bf16.mxu1 %v5508_v5  ;;  %4211 = vmatprep.mubr.msk.f32.mxu0 %vm649_vm0, %v641_v26  ;;  %v4797_v26 = vpack.c.bf16 %v3846_v21, %v3845_v20 }
  0xce   : > { %4760 = vmatpush3.bf16.msra.mxu0 %v4757_v22  ;;  %1624 = vperm.xlu1 %5010, %v1576_v3  }
  0xcf   : > { %4251 = vmatmul.mubr.msk.f32.gmra.mrb[2].mxu1 %vm649_vm0, %v3784_v29  ;;  %4212 = vmatmul.mubr.msk.f32.gmra.mrb[2].mxu0 %vm649_vm0, %v642_v30 }
  0xd0   : > { %4253 = vmatprep.mubr.msk.f32.mxu1 %vm649_vm0, %v3785_v31  ;;  %4780 = vmatpush3.bf16.msra.mxu1 %v5508_v5  ;;  %v2310_v5 = vld [vmem:[%s6109_s6 + $0x8] sm:$0xff] }
  0xd1   : > { %4782 = vmatprep.subr.bf16.mxu1 %v5516_v9  ;;  %4214 = vmatprep.mubr.msk.f32.mxu0 %vm649_vm0, %v643_v32 }
  0xd2   : > { %4762 = vmatprep.subr.bf16.mxu0 %v4761_v33  ;;  %2321 = vperm.xlu1 %5010, %v2310_v5  }
  0xd3   : > { %4254 = vmatmul.mubr.msk.f32.gmra.mrb[4].mxu1 %vm649_vm0, %v3786_v34  ;;  %4215 = vmatmul.mubr.msk.f32.gmra.mrb[4].mxu0 %vm649_vm0, %v644_v35 }
  0xd4   : > { %4256 = vmatprep.mubr.msk.f32.mxu1 %vm649_vm0, %v3787_v36  ;;  %4784 = vmatpush3.bf16.msra.mxu1 %v5516_v9  ;;  %v2904_v9 = vld [vmem:[%s6112_s9] sm:$0xff] }
  0xd5   : > { %4786 = vmatprep.subr.bf16.mxu1 %v5528_v13  ;;  %4217 = vmatprep.mubr.msk.f32.mxu0 %vm649_vm0, %v645_v37 }
  0xd6   : > { %4764 = vmatpush3.bf16.msra.mxu0 %v4761_v33  ;;  %2326 = vperm.xlu0 %5009, %v2311_v6  }
  0xd7   : > { %4257 = vmatmul.mubr.msk.f32.gmra.mrb[6].mxu1 %vm649_vm0, %v3788_v38  ;;  %4218 = vmatmul.mubr.msk.f32.gmra.mrb[6].mxu0 %vm649_vm0, %v646_v39  ;;  %v3847_v39 = vld [vmem:[%s6105_s2 + $0x50] sm:$0xff] }
  0xd8   : > { %4259 = vmatprep.mubr.msk.f32.mxu1 %vm649_vm0, %v3789_v40  ;;  %4788 = vmatpush3.bf16.msra.mxu1 %v5528_v13  ;;  %v797_v13 = vld [vmem:[%s6105_s2 + $0x10] sm:$0xff]  ;;  %v3848_v40 = vld [vmem:[%s6105_s2 + $0x58] sm:$0xff] }
  0xd9   : > { %4790 = vmatprep.subr.bf16.mxu1 %v5537_v16  ;;  %4220 = vmatprep.mubr.msk.f32.mxu0 %vm649_vm0, %v647_v41  ;;  %v4769_v18 = vpack.c.bf16 %v798_v14, %v797_v13  ;;  %v4801_v41 = vpack.c.bf16 %v3848_v40, %v3847_v39  ;;  %v1651_v39 = vld [vmem:[#allocation2 + $0x20] sm:$0xff] }
  0xda   : > { %4766 = vmatprep.subr.bf16.mxu0 %v4765_v56  ;;  %2331 = vperm.xlu1 %5010, %v2312_v7   ;;  %v1758_v40 = vld [vmem:[%s6108_s5] sm:$0xff] }
  0xdb   : > { %4260 = vmatmul.mubr.msk.f32.gmra.mrb[8].mxu1 %vm649_vm0, %v3790_v42  ;;  %4221 = vmatmul.mubr.msk.f32.gmra.mrb[8].mxu0 %vm649_vm0, %v648_v43 }
  0xdc   : > { %4792 = vmatpush3.bf16.msra.mxu1 %v5537_v16  ;;  %4332 = vmatprep.mubr.msk.f32.mxu1 %vm649_vm0, %v3825_v44 }
  0xdd   : > { %4794 = vmatprep.subr.bf16.mxu1 %v5545_v19  ;;  %2336 = vperm.xlu0 %5009, %v2313_v8  }
  0xde   : > { %2909 = vperm.xlu1 %5010, %v2904_v9  }
  0xe0   : > { %4796 = vmatpush3.bf16.msra.mxu1 %v5545_v19 }
  0xe1   : > { %2914 = vperm.xlu0 %5009, %v2905_v10  }
  0xe2   : > { %2919 = vperm.xlu1 %5010, %v2906_v11  }
  0xe3   : > { %4333 = vmatmul.mubr.msk.f32.vlgmr.msra.gmra.mrb[10].mxu1 %vm649_vm0, %v3826_v45 }
  0xe4   : > { %4335 = vmatprep.mubr.msk.f32.mxu1 %vm649_vm0, %v3827_v46 }
  0xe5   : > { %3395 = vperm.xlu0 %5009, %v3392_v12  }
  0xe7   : > { %4336 = vmatmul.mubr.msk.f32.gmra.mrb[12].mxu1 %vm649_vm0, %v3828_v47 }
  0xe8   : > { %4338 = vmatprep.mubr.msk.f32.mxu1 %vm649_vm0, %v3829_v48 }
  0xeb   : > { %4339 = vmatmul.mubr.msk.f32.gmra.mrb[14].mxu1 %vm649_vm0, %v3830_v49 }
  0xec   : > { %4341 = vmatprep.mubr.msk.f32.mxu1 %vm649_vm0, %v3831_v50 }
  0xef   : > { %4342 = vmatmul.mubr.msk.f32.gmra.mrb[16].mxu1 %vm649_vm0, %v3832_v51 }
  0xf0   : > { %4344 = vmatprep.mubr.msk.f32.mxu1 %vm649_vm0, %v3833_v52  ;;  %v5212_v52 = vmov 0.0|0.0  }
  0xf1   : > { %4805 = vmatprep.subr.bf16.mxu1 %v5212_v52 }
  0xf3   : > { %4345 = vmatmul.mubr.msk.f32.gmra.mrb[18].mxu1 %vm649_vm0, %v3834_v53  ;;  %v5214_v53 = vmov 0.0  }
  0xf4   : > { %4390 = vmatprep.mubr.msk.f32.mxu1 %vm5213_vm2, %v5214_v53 }
 0x12b   : > { %v1590_v54 = vpop.permute.xlu1 %1589 }
 0x12c   : > { %v1580_v55 = vpop.permute.xlu0 %1579 }
 0x130   : > { %v1585_v57 = vpop.permute.xlu0 %1584 }
 0x136   : > { %v1600_v2 = vpop.permute.xlu0 %1599 }
 0x19e   : > { %v4249_v15 = vpop.f32.mrb[0].mxu1  ;;  %v4210_v16 = vpop.f32.mrb[0].mxu0 }
 0x19f   : > { %v906_v17 = vpop.f32.mrb[1].mxu1  ;;  %v746_v19 = vpop.f32.mrb[1].mxu0 }
 0x1a0   : > { %4270 = vmatprep.mubr.msk.f32.mxu0 %vm960_vm1, %v906_v17 }
 0x1a1   : > { %4271 = vmatmul.mubr.msk.f32.vlgmr.msra.gmra.mrb[10].mxu0 %vm960_vm1, %v4249_v15  ;;  %v1610_v15 = vpop.permute.xlu0 %1609 }
 0x1a2   : > { %v4252_v22 = vpop.f32.mrb[2].mxu1  ;;  %4768 = vmatpush3.bf16.msra.mxu0 %v4765_v56  ;;  %v4213_v23 = vpop.f32.mrb[2].mxu0 }
 0x1a3   : > { %v916_v24 = vpop.f32.mrb[3].mxu1  ;;  %4770 = vmatprep.subr.bf16.mxu0 %v4769_v18  ;;  %v756_v25 = vpop.f32.mrb[3].mxu0 }
 0x1a4   : > { %4273 = vmatprep.mubr.msk.f32.mxu0 %vm960_vm1, %v916_v24  ;;  %v1595_v56 = vpop.permute.xlu1 %1594 }
 0x1a5   : > { %4274 = vmatmul.mubr.msk.f32.gmra.mrb[12].mxu0 %vm960_vm1, %v4252_v22 }
 0x1a6   : > { %v4255_v27 = vpop.f32.mrb[4].mxu1  ;;  %4772 = vmatpush3.bf16.msra.mxu0 %v4769_v18  ;;  %v4216_v28 = vpop.f32.mrb[4].mxu0 }
 0x1a7   : > { %v926_v29 = vpop.f32.mrb[5].mxu1  ;;  %v766_v30 = vpop.f32.mrb[5].mxu0  ;;  %4798 = vmatprep.subr.bf16.mxu0 %v4797_v26 }
 0x1a8   : > { %4276 = vmatprep.mubr.msk.f32.mxu0 %vm960_vm1, %v926_v29  ;;  %v1605_v63 = vpop.permute.xlu1 %1604 }
 0x1a9   : > { %4277 = vmatmul.mubr.msk.f32.gmra.mrb[14].mxu0 %vm960_vm1, %v4255_v27  ;;  %v1620_v27 = vpop.permute.xlu0 %1619 }
 0x1aa   : > { %v4258_v31 = vpop.f32.mrb[6].mxu1  ;;  %v4219_v32 = vpop.f32.mrb[6].mxu0 }
 0x1ab   : > { %v936_v33 = vpop.f32.mrb[7].mxu1  ;;  %v776_v34 = vpop.f32.mrb[7].mxu0 }
 0x1ac   : > { %4279 = vmatprep.mubr.msk.f32.mxu0 %vm960_vm1, %v936_v33  ;;  %v1615_v12 = vpop.permute.xlu1 %1614 }
 0x1ad   : > { %4280 = vmatmul.mubr.msk.f32.gmra.mrb[16].mxu0 %vm960_vm1, %v4258_v31 }
 0x1ae   : > { %v4261_v35 = vpop.f32.mrb[8].mxu1  ;;  %v4222_v36 = vpop.f32.mrb[8].mxu0 }
 0x1af   : > { %v946_v37 = vpop.f32.mrb[9].mxu1  ;;  %v786_v38 = vpop.f32.mrb[9].mxu0 }
 0x1b0   : > { %4282 = vmatprep.mubr.msk.f32.mxu0 %vm960_vm1, %v946_v37  ;;  %v1625_v24 = vpop.permute.xlu1 %1624  ;;  %v1649_v37 = vld [vmem:[#allocation2 + $0x10] sm:$0xff] }
 0x1b1   : > { %4283 = vmatmul.mubr.msk.f32.gmra.mrb[18].mxu0 %vm960_vm1, %v4261_v35  ;;  %v1647_v35 = vld [vmem:[#allocation2] sm:$0xff] }
 0x1b2   : > { %4293 = vmatprep.mubr.msk.f32.mxu0 %vm960_vm1, %v746_v19 }
 0x1b5   : > { %4294 = vmatmul.mubr.msk.f32.vlgmr.msra.gmra.mrb[10].mxu0 %vm960_vm1, %v4210_v16 }
 0x1b6   : > { %4296 = vmatprep.mubr.msk.f32.mxu0 %vm960_vm1, %v756_v25  ;;  %4800 = vmatpush3.bf16.msra.mxu0 %v4797_v26  ;;  %v4334_v42 = vpop.f32.mrb[10].mxu1 }
 0x1b7   : > { %4802 = vmatprep.subr.bf16.mxu0 %v4801_v41  ;;  %v1358_v43 = vpop.f32.mrb[11].mxu1 }
 0x1b9   : > { %4297 = vmatmul.mubr.msk.f32.gmra.mrb[12].mxu0 %vm960_vm1, %v4213_v23 }
 0x1ba   : > { %4299 = vmatprep.mubr.msk.f32.mxu0 %vm960_vm1, %v766_v30  ;;  %4804 = vmatpush3.bf16.msra.mxu0 %v4801_v41  ;;  %v4337_v44 = vpop.f32.mrb[12].mxu1  ;;  %v1759_v41 = vld [vmem:[%s6108_s5 + $0x8] sm:$0xff] }
 0x1bb   : > { %v1368_v45 = vpop.f32.mrb[13].mxu1  ;;  %4835 = vmatprep.subr.bf16.mxu0 %v5212_v52 }
 0x1bd   : > { %4300 = vmatmul.mubr.msk.f32.gmra.mrb[14].mxu0 %vm960_vm1, %v4216_v28 }
 0x1be   : > { %4302 = vmatprep.mubr.msk.f32.mxu0 %vm960_vm1, %v776_v34  ;;  %v4340_v46 = vpop.f32.mrb[14].mxu1 }
 0x1bf   : > { %v1378_v47 = vpop.f32.mrb[15].mxu1 }
 0x1c1   : > { %4303 = vmatmul.mubr.msk.f32.gmra.mrb[16].mxu0 %vm960_vm1, %v4219_v32 }
 0x1c2   : > { %4305 = vmatprep.mubr.msk.f32.mxu0 %vm960_vm1, %v786_v38  ;;  %v4343_v48 = vpop.f32.mrb[16].mxu1  ;;  %v1650_v38 = vld [vmem:[#allocation2 + $0x18] sm:$0xff] }
 0x1c3   : > { %v1388_v49 = vpop.f32.mrb[17].mxu1 }
 0x1c5   : > { %4306 = vmatmul.mubr.msk.f32.gmra.mrb[18].mxu0 %vm960_vm1, %v4222_v36  ;;  %v1648_v36 = vld [vmem:[#allocation2 + $0x8] sm:$0xff] }
 0x1c6   : > { %4355 = vmatprep.mubr.msk.f32.mxu0 %vm960_vm1, %v1358_v43  ;;  %v4346_v50 = vpop.f32.mrb[18].mxu1  ;;  %v4839_v43 = vpack.c.bf16 %v1759_v41, %v1758_v40 }
 0x1c7   : > { %v1398_v51 = vpop.f32.mrb[19].mxu1 }
 0x1c9   : > { %4356 = vmatmul.mubr.msk.f32.vlgmr.msra.gmra.mrb[10].mxu0 %vm960_vm1, %v4334_v42  ;;  %v1761_v42 = vld [vmem:[#allocation2 + $0x28] sm:$0xff] }
 0x1ca   : > { %4358 = vmatprep.mubr.msk.f32.mxu0 %vm960_vm1, %v1368_v45  ;;  %v1763_v45 = vld [vmem:[#allocation2 + $0x38] sm:$0xff] }
 0x1cd   : > { %4359 = vmatmul.mubr.msk.f32.gmra.mrb[12].mxu0 %vm960_vm1, %v4337_v44  ;;  %v1762_v44 = vld [vmem:[#allocation2 + $0x30] sm:$0xff] }
 0x1ce   : > { %4361 = vmatprep.mubr.msk.f32.mxu0 %vm960_vm1, %v1378_v47  ;;  %v1765_v47 = vld [vmem:[#allocation2 + $0x48] sm:$0xff] }
 0x1d1   : > { %4362 = vmatmul.mubr.msk.f32.gmra.mrb[14].mxu0 %vm960_vm1, %v4340_v46  ;;  %v1764_v46 = vld [vmem:[#allocation2 + $0x40] sm:$0xff] }
 0x1d2   : > { %4364 = vmatprep.mubr.msk.f32.mxu0 %vm960_vm1, %v1388_v49  ;;  %v3870_v49 = vld [vmem:[%s6108_s5 + $0x18] sm:$0xff] }
 0x1d5   : > { %4365 = vmatmul.mubr.msk.f32.gmra.mrb[16].mxu0 %vm960_vm1, %v4343_v48  ;;  %v3869_v48 = vld [vmem:[%s6108_s5 + $0x10] sm:$0xff] }
 0x1d6   : > { %4367 = vmatprep.mubr.msk.f32.mxu0 %vm960_vm1, %v1398_v51 }
 0x1d9   : > { %4368 = vmatmul.mubr.msk.f32.gmra.mrb[18].mxu0 %vm960_vm1, %v4346_v50  ;;  %v4836_v50 = vpack.c.bf16 %v3870_v49, %v3869_v48 }
 0x1da   : > { %4444 = vmatprep.mubr.msk.f32.mxu0 %vm5213_vm2, %v5214_v53 }
 0x1db   : > { %4837 = vmatpush3.bf16.msra.mxu0 %v4836_v50 }
 0x1dc   : > { %4841 = vmatprep.subr.bf16.mxu0 %v5212_v52 }
 0x29c   : > { %v4357_v58 = vpop.f32.mrb[10].mxu0 }
 0x29d   : > { %v1628_v59 = vadd.f32 %v4357_v58, %v1585_v57  ;;  %v1508_v60 = vpop.f32.mrb[11].mxu0 }
 0x29e   : > { %v1627_v61 = vadd.f32 %v1580_v55, %v1508_v60 }
 0x29f   : > { %v1638_v62 = vmax.f32 %v1628_v59, 0.0 }
 0x2a0   : > { %v1637_v0 = vmax.f32 %v1627_v61, 0.0  ;;  %v4360_v1 = vpop.f32.mrb[12].mxu0 }
 0x2a1   : > { %v1630_v3 = vadd.f32 %v4360_v1, %v1595_v56  ;;  %v1518_v4 = vpop.f32.mrb[13].mxu0 }
 0x2a2   : > { %v5805_v5 = vpack.c.bf16 %v1638_v62, %v1637_v0  ;;  %v1629_v6 = vadd.f32 %v1590_v54, %v1518_v4 }
 0x2a3   : > { %v1640_v7 = vmax.f32 %v1630_v3, 0.0 }
 0x2a4   : > { %v1639_v8 = vmax.f32 %v1629_v6, 0.0  ;;  %v4363_v9 = vpop.f32.mrb[14].mxu0  ;;  %4807 = vmatpush3.bf16.msra.mxu1 %v5805_v5 }
 0x2a5   : > { %v1632_v10 = vadd.f32 %v4363_v9, %v1605_v63  ;;  %v1528_v11 = vpop.f32.mrb[15].mxu0  ;;  %4808 = vmatprep.subr.bf16.mxu1 %v5212_v52  ;;  %v2086_v9 = vld [vmem:[#allocation2 + $0x50] sm:$0xff] }
 0x2a6   : > { %v5809_v13 = vpack.c.bf16 %v1640_v7, %v1639_v8  ;;  %v1631_v14 = vadd.f32 %v1600_v2, %v1528_v11  ;;  %v2088_v11 = vld [vmem:[#allocation2 + $0x60] sm:$0xff] }
 0x2a7   : > { %v1642_v16 = vmax.f32 %v1632_v10, 0.0  ;;  %v2087_v10 = vld [vmem:[#allocation2 + $0x58] sm:$0xff] }
 0x2a8   : > { %v1641_v17 = vmax.f32 %v1631_v14, 0.0  ;;  %v4366_v18 = vpop.f32.mrb[16].mxu0  ;;  %4810 = vmatpush3.bf16.msra.mxu1 %v5809_v13  ;;  %v3886_v14 = vld [vmem:[%s6108_s5 + $0x20] sm:$0xff] }
 0x2a9   : > { %v1634_v19 = vadd.f32 %v4366_v18, %v1615_v12  ;;  %v1538_v20 = vpop.f32.mrb[17].mxu0  ;;  %4811 = vmatprep.subr.bf16.mxu1 %v5212_v52  ;;  %v2089_v12 = vld [vmem:[#allocation2 + $0x68] sm:$0xff] }
 0x2aa   : > { %v5813_v21 = vpack.c.bf16 %v1642_v16, %v1641_v17  ;;  %v1633_v22 = vadd.f32 %v1610_v15, %v1538_v20  ;;  %v3887_v15 = vld [vmem:[%s6108_s5 + $0x28] sm:$0xff] }
 0x2ab   : > { %v1644_v23 = vmax.f32 %v1634_v19, 0.0  ;;  %v4857_v16 = vpack.c.bf16 %v3887_v15, %v3886_v14 }
 0x2ac   : > { %v1643_v25 = vmax.f32 %v1633_v22, 0.0  ;;  %v4369_v26 = vpop.f32.mrb[18].mxu0  ;;  %4813 = vmatpush3.bf16.msra.mxu1 %v5813_v21 }
 0x2ad   : > { %v1636_v28 = vadd.f32 %v4369_v26, %v1625_v24  ;;  %v1548_v29 = vpop.f32.mrb[19].mxu0  ;;  %4814 = vmatprep.subr.bf16.mxu1 %v5212_v52 }
 0x2ae   : > { %v5817_v30 = vpack.c.bf16 %v1644_v23, %v1643_v25  ;;  %v1635_v31 = vadd.f32 %v1620_v27, %v1548_v29 }
 0x2af   : > { %v1646_v32 = vmax.f32 %v1636_v28, 0.0 }
 0x2b0   : > { %v1645_v33 = vmax.f32 %v1635_v31, 0.0  ;;  %4816 = vmatpush3.bf16.msra.mxu1 %v5817_v30 }
 0x2b1   : > { %4817 = vmatprep.subr.bf16.mxu1 %v5212_v52 }
 0x2b2   : > { %v5821_v34 = vpack.c.bf16 %v1646_v32, %v1645_v33 }
 0x2b4   : > { %4819 = vmatpush3.bf16.msra.mxu1 %v5821_v34 }
 0x2b5   : > { %4820 = vmatprep.subr.bf16.mxu1 %v5212_v52 }
 0x2b7   : > { %4391 = vmatmul.mubr.msk.f32.vlgmr.msra.gmra.mrb[20].mxu1 %vm1652_vm3, %v1647_v35 }
 0x2b8   : > { %4822 = vmatpush3.bf16.msra.mxu1 %v5805_v5  ;;  %4393 = vmatprep.mubr.msk.f32.mxu1 %vm5213_vm2, %v5214_v53 }
 0x2b9   : > { %4823 = vmatprep.subr.bf16.mxu1 %v5212_v52 }
 0x2bb   : > { %4394 = vmatmul.mubr.msk.f32.gmra.mrb[22].mxu1 %vm1652_vm3, %v1648_v36 }
 0x2bc   : > { %4825 = vmatpush3.bf16.msra.mxu1 %v5809_v13  ;;  %4396 = vmatprep.mubr.msk.f32.mxu1 %vm5213_vm2, %v5214_v53 }
 0x2bd   : > { %4826 = vmatprep.subr.bf16.mxu1 %v5212_v52 }
 0x2bf   : > { %4397 = vmatmul.mubr.msk.f32.gmra.mrb[24].mxu1 %vm1652_vm3, %v1649_v37 }
 0x2c0   : > { %4828 = vmatpush3.bf16.msra.mxu1 %v5813_v21  ;;  %4399 = vmatprep.mubr.msk.f32.mxu1 %vm5213_vm2, %v5214_v53 }
 0x2c1   : > { %4829 = vmatprep.subr.bf16.mxu1 %v5212_v52 }
 0x2c3   : > { %4400 = vmatmul.mubr.msk.f32.gmra.mrb[26].mxu1 %vm1652_vm3, %v1650_v38 }
 0x2c4   : > { %4831 = vmatpush3.bf16.msra.mxu1 %v5817_v30  ;;  %4402 = vmatprep.mubr.msk.f32.mxu1 %vm5213_vm2, %v5214_v53 }
 0x2c5   : > { %4832 = vmatprep.subr.bf16.mxu1 %v5212_v52 }
 0x2c7   : > { %4403 = vmatmul.mubr.msk.f32.gmra.mrb[28].mxu1 %vm1652_vm3, %v1651_v39 }
 0x2c8   : > { %4834 = vmatpush3.bf16.msra.mxu1 %v5821_v34  ;;  %4425 = vmatprep.mubr.msk.f32.mxu1 %vm5213_vm2, %v5214_v53 }
 0x2c9   : > { %4838 = vmatprep.subr.bf16.mxu1 %v5212_v52 }
 0x2cb   : > { %4426 = vmatmul.mubr.msk.f32.vlgmr.msra.gmra.mrb[30].mxu1 %vm1652_vm3, %v1761_v42 }
 0x2cc   : > { %4428 = vmatprep.mubr.msk.f32.mxu1 %vm5213_vm2, %v5214_v53  ;;  %4840 = vmatpush3.bf16.msra.mxu1 %v4839_v43 }
 0x2cd   : > { %4856 = vmatprep.subr.bf16.mxu1 %v5212_v52 }
 0x2cf   : > { %4429 = vmatmul.mubr.msk.f32.gmra.mrb[32].mxu1 %vm1652_vm3, %v1762_v44 }
 0x2d0   : > { %4431 = vmatprep.mubr.msk.f32.mxu1 %vm5213_vm2, %v5214_v53 }
 0x2d3   : > { %4432 = vmatmul.mubr.msk.f32.gmra.mrb[34].mxu1 %vm1652_vm3, %v1763_v45 }
 0x2d4   : > { %4434 = vmatprep.mubr.msk.f32.mxu1 %vm5213_vm2, %v5214_v53 }
 0x2d7   : > { %4435 = vmatmul.mubr.msk.f32.gmra.mrb[36].mxu1 %vm1652_vm3, %v1764_v46 }
 0x2d8   : > { %4437 = vmatprep.mubr.msk.f32.mxu1 %vm5213_vm2, %v5214_v53 }
 0x2db   : > { %4438 = vmatmul.mubr.msk.f32.gmra.mrb[38].mxu1 %vm1652_vm3, %v1765_v47 }
 0x2dc   : > { %4463 = vmatprep.mubr.msk.f32.mxu1 %vm5213_vm2, %v5214_v53 }
 0x38a   : > { %v1734_v51 = vpop.f32.mrb[20].mxu1 }
 0x38b   : > { %v4392_v54 = vpop.f32.mrb[21].mxu1  ;;  %4464 = vmatmul.mubr.msk.f32.vlgmr.msra.gmra.mrb[40].mxu1 %vm1874_vm4, %v1734_v51 }
 0x38c   : > { %4466 = vmatprep.mubr.msk.f32.mxu1 %vm5213_vm2, %v5214_v53  ;;  %4858 = vmatpush3.bf16.msra.mxu1 %v4857_v16 }
 0x38d   : > { %4859 = vmatprep.subr.bf16.mxu1 %v5212_v52 }
 0x38e   : > { %v1739_v55 = vpop.f32.mrb[22].mxu1 }
 0x38f   : > { %v4395_v56 = vpop.f32.mrb[23].mxu1  ;;  %4467 = vmatmul.mubr.msk.f32.gmra.mrb[42].mxu1 %vm1874_vm4, %v1739_v55 }
 0x390   : > { %4469 = vmatprep.mubr.msk.f32.mxu1 %vm5213_vm2, %v5214_v53 }
 0x392   : > { %v1744_v57 = vpop.f32.mrb[24].mxu1 }
 0x393   : > { %v4398_v58 = vpop.f32.mrb[25].mxu1  ;;  %4470 = vmatmul.mubr.msk.f32.gmra.mrb[44].mxu1 %vm1874_vm4, %v1744_v57  ;;  %v2317_v57 = vpop.permute.xlu0 %2316 }
 0x394   : > { %4472 = vmatprep.mubr.msk.f32.mxu1 %vm5213_vm2, %v5214_v53 }
 0x396   : > { %v1749_v59 = vpop.f32.mrb[26].mxu1 }
 0x397   : > { %v4401_v60 = vpop.f32.mrb[27].mxu1  ;;  %4473 = vmatmul.mubr.msk.f32.gmra.mrb[46].mxu1 %vm1874_vm4, %v1749_v59 }
 0x398   : > { %4475 = vmatprep.mubr.msk.f32.mxu1 %vm5213_vm2, %v5214_v53 }
 0x39a   : > { %v1754_v61 = vpop.f32.mrb[28].mxu1 }
 0x39b   : > { %v4404_v62 = vpop.f32.mrb[29].mxu1  ;;  %4476 = vmatmul.mubr.msk.f32.gmra.mrb[48].mxu1 %vm1874_vm4, %v1754_v61 }
 0x39c   : > { %4517 = vmatprep.mubr.msk.f32.mxu1 %vm5213_vm2, %v5214_v53  ;;  %v2322_v62 = vpop.permute.xlu1 %2321 }
 0x39e   : > { %v1847_v63 = vpop.f32.mrb[30].mxu1 }
 0x39f   : > { %v4427_v0 = vpop.f32.mrb[31].mxu1  ;;  %4445 = vmatmul.mubr.msk.f32.vlgmr.msra.gmra.mrb[20].mxu0 %vm1874_vm4, %v1847_v63 }
 0x3a0   : > { %4843 = vmatpush3.bf16.msra.mxu0 %v5805_v5  ;;  %4447 = vmatprep.mubr.msk.f32.mxu0 %vm5213_vm2, %v5214_v53 }
 0x3a1   : > { %4844 = vmatprep.subr.bf16.mxu0 %v5212_v52 }
 0x3a2   : > { %v1852_v1 = vpop.f32.mrb[32].mxu1 }
 0x3a3   : > { %v4430_v2 = vpop.f32.mrb[33].mxu1  ;;  %4448 = vmatmul.mubr.msk.f32.gmra.mrb[22].mxu0 %vm1874_vm4, %v1852_v1 }
 0x3a4   : > { %4846 = vmatpush3.bf16.msra.mxu0 %v5809_v13  ;;  %4450 = vmatprep.mubr.msk.f32.mxu0 %vm5213_vm2, %v5214_v53  ;;  %v2090_v13 = vld [vmem:[#allocation2 + $0x70] sm:$0xff] }
 0x3a5   : > { %4847 = vmatprep.subr.bf16.mxu0 %v5212_v52 }
 0x3a6   : > { %v1857_v3 = vpop.f32.mrb[34].mxu1 }
 0x3a7   : > { %v4433_v4 = vpop.f32.mrb[35].mxu1  ;;  %4451 = vmatmul.mubr.msk.f32.gmra.mrb[24].mxu0 %vm1874_vm4, %v1857_v3 }
 0x3a8   : > { %4849 = vmatpush3.bf16.msra.mxu0 %v5813_v21  ;;  %4453 = vmatprep.mubr.msk.f32.mxu0 %vm5213_vm2, %v5214_v53 }
 0x3a9   : > { %4850 = vmatprep.subr.bf16.mxu0 %v5212_v52 }
 0x3aa   : > { %v1862_v5 = vpop.f32.mrb[36].mxu1 }
 0x3ab   : > { %v4436_v6 = vpop.f32.mrb[37].mxu1  ;;  %4454 = vmatmul.mubr.msk.f32.gmra.mrb[26].mxu0 %vm1874_vm4, %v1862_v5 }
 0x3ac   : > { %4852 = vmatpush3.bf16.msra.mxu0 %v5817_v30  ;;  %4456 = vmatprep.mubr.msk.f32.mxu0 %vm5213_vm2, %v5214_v53  ;;  %v2327_v6 = vpop.permute.xlu0 %2326 }
 0x3ad   : > { %4853 = vmatprep.subr.bf16.mxu0 %v5212_v52 }
 0x3ae   : > { %v1867_v7 = vpop.f32.mrb[38].mxu1 }
 0x3af   : > { %v4439_v8 = vpop.f32.mrb[39].mxu1  ;;  %4457 = vmatmul.mubr.msk.f32.gmra.mrb[28].mxu0 %vm1874_vm4, %v1867_v7 }
 0x3b0   : > { %4855 = vmatpush3.bf16.msra.mxu0 %v5821_v34  ;;  %4498 = vmatprep.mubr.msk.f32.mxu0 %vm5213_vm2, %v5214_v53 }
 0x3b1   : > { %4570 = vmatprep.subr.mxu0 %v5214_v53 }
 0x3b3   : > { %4499 = vmatmul.mubr.msk.f32.vlgmr.msra.gmra.mrb[30].mxu0 %vm1652_vm3, %v2086_v9 }
 0x3b4   : > { %4501 = vmatprep.mubr.msk.f32.mxu0 %vm5213_vm2, %v5214_v53 }
 0x3b7   : > { %4502 = vmatmul.mubr.msk.f32.gmra.mrb[32].mxu0 %vm1652_vm3, %v2087_v10 }
 0x3b8   : > { %4504 = vmatprep.mubr.msk.f32.mxu0 %vm5213_vm2, %v5214_v53 }
 0x3bb   : > { %4505 = vmatmul.mubr.msk.f32.gmra.mrb[34].mxu0 %vm1652_vm3, %v2088_v11  ;;  %v2332_v11 = vpop.permute.xlu1 %2331 }
 0x3bc   : > { %4507 = vmatprep.mubr.msk.f32.mxu0 %vm5213_vm2, %v5214_v53 }
 0x3bf   : > { %4508 = vmatmul.mubr.msk.f32.gmra.mrb[36].mxu0 %vm1652_vm3, %v2089_v12 }
 0x3c0   : > { %4510 = vmatprep.mubr.msk.f32.mxu0 %vm5213_vm2, %v5214_v53 }
 0x3c3   : > { %4511 = vmatmul.mubr.msk.f32.gmra.mrb[38].mxu0 %vm1652_vm3, %v2090_v13 }
 0x3c4   : > { %4572 = vmatprep.mubr.msk.f32.mxu0 %vm5213_vm2, %v5214_v53 }
 0x45e   : > { %v2061_v17 = vpop.f32.mrb[40].mxu1 }
 0x45f   : > { %v4465_v18 = vpop.f32.mrb[41].mxu1 }
 0x460   : > { %v2337_v18 = vpop.permute.xlu0 %2336 }
 0x462   : > { %v2066_v19 = vpop.f32.mrb[42].mxu1 }
 0x463   : > { %v4468_v20 = vpop.f32.mrb[43].mxu1 }
 0x466   : > { %v2071_v21 = vpop.f32.mrb[44].mxu1 }
 0x467   : > { %v4471_v22 = vpop.f32.mrb[45].mxu1 }
 0x468   : > { %v2349_v22 = vld [vmem:[#allocation4] sm:$0xff] }
 0x46a   : > { %v2076_v23 = vpop.f32.mrb[46].mxu1 }
 0x46b   : > { %v4474_v24 = vpop.f32.mrb[47].mxu1 }
 0x46c   : > { %v2351_v24 = vld [vmem:[#allocation4 + $0x10] sm:$0xf] }
 0x46e   : > { %v2081_v25 = vpop.f32.mrb[48].mxu1 }
 0x46f   : > { %v4477_v26 = vpop.f32.mrb[49].mxu1 }
 0x470   : > { %v2445_v26 = vld [vmem:[#allocation4 + $0x20] sm:$0xff] }
 0x472   : > { %v1956_v27 = vpop.f32.mrb[20].mxu0 }
 0x473   : > { %v2062_v28 = vadd.f32 %v2061_v17, %v1956_v27  ;;  %v4446_v29 = vpop.f32.mrb[21].mxu0  ;;  %v2446_v27 = vld [vmem:[#allocation4 + $0x28] sm:$0xf] }
 0x474   : > { %v3899_v29 = vld [vmem:[%s6149_s0 + $0x8] sm:$0xff] }
 0x475   : > { %4571 = vmatpush3.msra.mxu0 %v3899_v29 }
 0x476   : > { %v1961_v30 = vpop.f32.mrb[22].mxu0  ;;  %4871 = vmatprep.subr.bf16.mxu0 %v5212_v52 }
 0x477   : > { %v2067_v31 = vadd.f32 %v2066_v19, %v1961_v30  ;;  %v4449_v32 = vpop.f32.mrb[23].mxu0 }
 0x47a   : > { %v1966_v33 = vpop.f32.mrb[24].mxu0 }
 0x47b   : > { %v2072_v34 = vadd.f32 %v2071_v21, %v1966_v33  ;;  %v4452_v35 = vpop.f32.mrb[25].mxu0 }
 0x47e   : > { %v1971_v36 = vpop.f32.mrb[26].mxu0 }
 0x47f   : > { %v2077_v37 = vadd.f32 %v2076_v23, %v1971_v36  ;;  %v4455_v38 = vpop.f32.mrb[27].mxu0  ;;  %v2350_v23 = vld [vmem:[#allocation4 + $0x8] sm:$0xff] }
 0x482   : > { %v1976_v39 = vpop.f32.mrb[28].mxu0 }
 0x483   : > { %v2082_v40 = vadd.f32 %v2081_v25, %v1976_v39  ;;  %v4458_v41 = vpop.f32.mrb[29].mxu0  ;;  %v2444_v25 = vld [vmem:[#allocation4 + $0x18] sm:$0xff] }
 0x486   : > { %v2172_v42 = vpop.f32.mrb[30].mxu0 }
 0x487   : > { %v4500_v43 = vpop.f32.mrb[31].mxu0  ;;  %4518 = vmatmul.mubr.msk.f32.vlgmr.msra.gmra.mrb[50].mxu1 %vm1874_vm4, %v2172_v42  ;;  %v2718_v42 = vld [vmem:[#allocation4 + $0x30] sm:$0xff] }
 0x488   : > { %4520 = vmatprep.mubr.msk.f32.mxu1 %vm5213_vm2, %v5214_v53  ;;  %v2719_v43 = vld [vmem:[#allocation4 + $0x38] sm:$0xff] }
 0x48a   : > { %v2177_v44 = vpop.f32.mrb[32].mxu0 }
 0x48b   : > { %v4503_v45 = vpop.f32.mrb[33].mxu0  ;;  %4521 = vmatmul.mubr.msk.f32.gmra.mrb[52].mxu1 %vm1874_vm4, %v2177_v44  ;;  %v2720_v44 = vld [vmem:[#allocation4 + $0x40] sm:$0xf] }
 0x48c   : > { %4523 = vmatprep.mubr.msk.f32.mxu1 %vm5213_vm2, %v5214_v53  ;;  %v3909_v45 = vld [vmem:[%s6149_s0 + $0x10] sm:$0xff] }
 0x48e   : > { %v2182_v46 = vpop.f32.mrb[34].mxu0 }
 0x48f   : > { %v4506_v47 = vpop.f32.mrb[35].mxu0  ;;  %4524 = vmatmul.mubr.msk.f32.gmra.mrb[54].mxu1 %vm1874_vm4, %v2182_v46 }
 0x490   : > { %4526 = vmatprep.mubr.msk.f32.mxu1 %vm5213_vm2, %v5214_v53 }
 0x492   : > { %v2187_v48 = vpop.f32.mrb[36].mxu0 }
 0x493   : > { %v4509_v49 = vpop.f32.mrb[37].mxu0  ;;  %4527 = vmatmul.mubr.msk.f32.gmra.mrb[56].mxu1 %vm1874_vm4, %v2187_v48 }
 0x494   : > { %4529 = vmatprep.mubr.msk.f32.mxu1 %vm5213_vm2, %v5214_v53 }
 0x496   : > { %v2192_v50 = vpop.f32.mrb[38].mxu0 }
 0x497   : > { %4530 = vmatmul.mubr.msk.f32.gmra.mrb[58].mxu1 %vm1874_vm4, %v2192_v50  ;;  %v4512_v51 = vpop.f32.mrb[39].mxu0 }
 0x498   : > { %4542 = vmatprep.mubr.msk.f32.mxu1 %vm5213_vm2, %v5214_v53 }
 0x55a   : > { %v2280_v54 = vpop.f32.mrb[50].mxu1 }
 0x55b   : > { %v2304_v55 = vadd.f32 %v2280_v54, %v2062_v28  ;;  %v4519_v56 = vpop.f32.mrb[51].mxu1  ;;  %v2442_v28 = vld [vmem:[%s6149_s0] sm:$0xff] }
 0x55d   : > { %v2339_v59 = vadd.f32 %v2317_v57, %v2304_v55 }
 0x55e   : > { %v2285_v58 = vpop.f32.mrb[52].mxu1 }
 0x55f   : > { %v2305_v60 = vadd.f32 %v2285_v58, %v2067_v31  ;;  %v4522_v61 = vpop.f32.mrb[53].mxu1  ;;  %v2344_v1 = vmax.f32 %v2339_v59, 0.0 }
 0x561   : > { %v2340_v63 = vadd.f32 %v2322_v62, %v2305_v60 }
 0x562   : > { %v2290_v0 = vpop.f32.mrb[54].mxu1 }
 0x563   : > { %v2345_v2 = vmax.f32 %v2340_v63, 0.0  ;;  %v2306_v3 = vadd.f32 %v2290_v0, %v2072_v34  ;;  %v4525_v4 = vpop.f32.mrb[55].mxu1 }
 0x565   : > { %v5956_v5 = vpack.c.bf16 %v2345_v2, %v2344_v1  ;;  %v2341_v8 = vadd.f32 %v2327_v6, %v2306_v3 }
 0x566   : > { %v2295_v7 = vpop.f32.mrb[56].mxu1 }
 0x567   : > { %v2307_v9 = vadd.f32 %v2295_v7, %v2077_v37  ;;  %v4528_v10 = vpop.f32.mrb[57].mxu1  ;;  %4861 = vmatpush3.bf16.msra.mxu1 %v5956_v5  ;;  %v2346_v14 = vmax.f32 %v2341_v8, 0.0  ;;  %v2910_v8 = vpop.permute.xlu1 %2909 }
 0x568   : > { %4862 = vmatprep.subr.bf16.mxu1 %v5212_v52 }
 0x569   : > { %v2342_v12 = vadd.f32 %v2332_v11, %v2307_v9 }
 0x56a   : > { %v2300_v13 = vpop.f32.mrb[58].mxu1 }
 0x56b   : > { %v2347_v15 = vmax.f32 %v2342_v12, 0.0  ;;  %v2308_v16 = vadd.f32 %v2300_v13, %v2082_v40  ;;  %v4531_v17 = vpop.f32.mrb[59].mxu1  ;;  %v2915_v13 = vpop.permute.xlu0 %2914 }
 0x56d   : > { %v4863_v19 = vpack.c.bf16 %v2347_v15, %v2346_v14  ;;  %v2343_v20 = vadd.f32 %v2337_v18, %v2308_v16 }
 0x56f   : > { %4864 = vmatpush3.bf16.msra.mxu1 %v4863_v19  ;;  %v2348_v21 = vmax.f32 %v2343_v20, 0.0  ;;  %v2920_v20 = vpop.permute.xlu1 %2919 }
 0x570   : > { %4540 = vmatprep.subr.mxu1 %v5214_v53 }
 0x573   : > { %4541 = vmatpush3.msra.mxu1 %v2348_v21 }
 0x574   : > { %4543 = vmatmul.mubr.msk.f32.vlgmr.msra.gmra.mrb[60].mxu1 %vm2352_vm5, %v2349_v22  ;;  %4865 = vmatprep.subr.bf16.mxu1 %v5212_v52 }
 0x575   : > { %4867 = vmatpush3.bf16.msra.mxu1 %v5956_v5  ;;  %4545 = vmatprep.mubr.msk.f32.mxu1 %vm5213_vm2, %v5214_v53 }
 0x576   : > { %4868 = vmatprep.subr.bf16.mxu1 %v5212_v52 }
 0x578   : > { %4546 = vmatmul.mubr.msk.f32.gmra.mrb[62].mxu1 %vm2352_vm5, %v2350_v23 }
 0x579   : > { %4870 = vmatpush3.bf16.msra.mxu1 %v4863_v19  ;;  %4548 = vmatprep.mubr.msk.f32.mxu1 %vm5213_vm2, %v5214_v53 }
 0x57a   : > { %4559 = vmatprep.subr.mxu1 %v5214_v53 }
 0x57c   : > { %4549 = vmatmul.mubr.msk.f32.gmra.mrb[64].mxu1 %vm2352_vm5, %v2351_v24  ;;  %v3915_v24 = vld [vmem:[%s6150_s28 + $0x2] sm:$0x3] }
 0x57d   : > { %4560 = vmatpush3.msra.mxu1 %v2348_v21  ;;  %4561 = vmatprep.mubr.msk.f32.mxu1 %vm5213_vm2, %v5214_v53 }
 0x57e   : > { %4581 = vmatprep.subr.mxu1 %v5214_v53 }
 0x580   : > { %4562 = vmatmul.mubr.msk.f32.vlgmr.msra.gmra.mrb[66].mxu1 %vm2352_vm5, %v2444_v25  ;;  %v2928_v25 = vld [vmem:[%s6150_s28] sm:$0x3] }
 0x581   : > { %4564 = vmatprep.mubr.msk.f32.mxu1 %vm5213_vm2, %v5214_v53  ;;  %4582 = vmatpush3.msra.mxu1 %v2442_v28  ;;  %v3007_v28 = vld [vmem:[%s6151_s30] sm:$0xf] }
 0x582   : > { %4611 = vmatprep.subr.mxu1 %v5214_v53 }
 0x584   : > { %4565 = vmatmul.mubr.msk.f32.gmra.mrb[68].mxu1 %vm2352_vm5, %v2445_v26  ;;  %v3923_v26 = vld [vmem:[%s6150_s28 + $0x4] sm:$0x3] }
 0x585   : > { %4567 = vmatprep.mubr.msk.f32.mxu1 %vm5213_vm2, %v5214_v53 }
 0x588   : > { %4568 = vmatmul.mubr.msk.f32.gmra.mrb[70].mxu1 %vm2352_vm5, %v2446_v27  ;;  %v3918_v27 = vld [vmem:[%s6151_s30 + $0x4] sm:$0xf] }
 0x589   : > { %4583 = vmatprep.mubr.msk.f32.mxu1 %vm5213_vm2, %v5214_v53 }
 0x647   : > { %v2428_v30 = vpop.f32.mrb[60].mxu1 }
 0x648   : > { %v4544_v31 = vpop.f32.mrb[61].mxu1  ;;  %4584 = vmatmul.mubr.msk.f32.vlgmr.msra.gmra.mrb[72].mxu1 %vm2538_vm6, %v2428_v30 }
 0x649   : > { %4586 = vmatprep.mubr.msk.f32.mxu1 %vm5213_vm2, %v5214_v53  ;;  %4612 = vmatpush3.msra.mxu1 %v3909_v45 }
 0x64a   : > { %4880 = vmatprep.subr.bf16.mxu1 %v5212_v52 }
 0x64b   : > { %v2433_v32 = vpop.f32.mrb[62].mxu1 }
 0x64c   : > { %v4547_v33 = vpop.f32.mrb[63].mxu1  ;;  %4587 = vmatmul.mubr.msk.f32.gmra.mrb[74].mxu1 %vm2538_vm6, %v2433_v32 }
 0x64d   : > { %4589 = vmatprep.mubr.msk.f32.mxu1 %vm5213_vm2, %v5214_v53  ;;  %v3926_v33 = vld [vmem:[%s6151_s30 + $0x8] sm:$0xf] }
 0x64f   : > { %v2438_v34 = vpop.f32.mrb[64].mxu1 }
 0x650   : > { %v4550_v35 = vpop.f32.mrb[65].mxu1  ;;  %4590 = vmatmul.mubr.msk.f32.gmra.mrb[76].mxu1 %vm2538_vm6, %v2438_v34 }
 0x651   : > { %4613 = vmatprep.mubr.msk.f32.mxu1 %vm5213_vm2, %v5214_v53 }
 0x653   : > { %v2522_v36 = vpop.f32.mrb[66].mxu1 }
 0x654   : > { %v4563_v37 = vpop.f32.mrb[67].mxu1  ;;  %4573 = vmatmul.mubr.msk.f32.vlgmr.msra.gmra.mrb[40].mxu0 %vm2538_vm6, %v2522_v36  ;;  %v3400_v36 = vld [vmem:[#allocation6] sm:$0xf] }
 0x655   : > { %4873 = vmatpush3.bf16.msra.mxu0 %v5956_v5  ;;  %4575 = vmatprep.mubr.msk.f32.mxu0 %vm5213_vm2, %v5214_v53  ;;  %v3558_v37 = vld [vmem:[#allocation9] sm:$0xff] }
 0x656   : > { %4874 = vmatprep.subr.bf16.mxu0 %v5212_v52 }
 0x657   : > { %v2527_v38 = vpop.f32.mrb[68].mxu1 }
 0x658   : > { %v4566_v39 = vpop.f32.mrb[69].mxu1  ;;  %4576 = vmatmul.mubr.msk.f32.gmra.mrb[42].mxu0 %vm2538_vm6, %v2527_v38  ;;  %v3559_v38 = vld [vmem:[#allocation9 + $0x8] sm:$0xff] }
 0x659   : > { %4876 = vmatpush3.bf16.msra.mxu0 %v4863_v19  ;;  %4578 = vmatprep.mubr.msk.f32.mxu0 %vm5213_vm2, %v5214_v53  ;;  %v3560_v39 = vld [vmem:[#allocation9 + $0x10] sm:$0xff] }
 0x65a   : > { %4600 = vmatprep.subr.mxu0 %v5214_v53 }
 0x65b   : > { %v2532_v40 = vpop.f32.mrb[70].mxu1 }
 0x65c   : > { %v4569_v41 = vpop.f32.mrb[71].mxu1  ;;  %4579 = vmatmul.mubr.msk.f32.gmra.mrb[44].mxu0 %vm2538_vm6, %v2532_v40  ;;  %v4887_v40 = vpack.c.bf16 %v3559_v38, %v3558_v37 }
 0x65d   : > { %4601 = vmatpush3.msra.mxu0 %v2348_v21  ;;  %4602 = vmatprep.mubr.msk.f32.mxu0 %vm5213_vm2, %v5214_v53  ;;  %v3561_v41 = vld [vmem:[#allocation9 + $0x18] sm:$0xff] }
 0x65e   : > { %4877 = vmatprep.subr.bf16.mxu0 %v5212_v52 }
 0x660   : > { %4603 = vmatmul.mubr.msk.f32.vlgmr.msra.gmra.mrb[46].mxu0 %vm2352_vm5, %v2718_v42  ;;  %v4890_v42 = vpack.c.bf16 %v3561_v41, %v3560_v39 }
 0x661   : > { %4605 = vmatprep.mubr.msk.f32.mxu0 %vm5213_vm2, %v5214_v53 }
 0x664   : > { %4606 = vmatmul.mubr.msk.f32.gmra.mrb[48].mxu0 %vm2352_vm5, %v2719_v43  ;;  %v3562_v43 = vld [vmem:[#allocation9 + $0x20] sm:$0xff] }
 0x665   : > { %4608 = vmatprep.mubr.msk.f32.mxu0 %vm5213_vm2, %v5214_v53 }
 0x668   : > { %4609 = vmatmul.mubr.msk.f32.gmra.mrb[50].mxu0 %vm2352_vm5, %v2720_v44  ;;  %v3563_v44 = vld [vmem:[#allocation9 + $0x28] sm:$0xff] }
 0x669   : > { %4628 = vmatprep.mubr.msk.f32.mxu0 %vm5213_vm2, %v5214_v53  ;;  %v4893_v45 = vpack.c.bf16 %v3563_v44, %v3562_v43 }
 0x71b   : > { %v2703_v46 = vpop.f32.mrb[72].mxu1 }
 0x71c   : > { %v4585_v47 = vpop.f32.mrb[73].mxu1 }
 0x71d   : > { %v3565_v47 = vld [vmem:[#allocation9 + $0x38] sm:$0xff] }
 0x71f   : > { %v2708_v48 = vpop.f32.mrb[74].mxu1 }
 0x720   : > { %v4588_v49 = vpop.f32.mrb[75].mxu1 }
 0x721   : > { %v3566_v49 = vld [vmem:[#allocation9 + $0x40] sm:$0xff] }
 0x723   : > { %v2713_v50 = vpop.f32.mrb[76].mxu1 }
 0x724   : > { %v4591_v51 = vpop.f32.mrb[77].mxu1 }
 0x727   : > { %v2614_v54 = vpop.f32.mrb[40].mxu0 }
 0x728   : > { %v2704_v55 = vadd.f32 %v2703_v46, %v2614_v54  ;;  %v4574_v56 = vpop.f32.mrb[41].mxu0  ;;  %v3564_v46 = vld [vmem:[#allocation9 + $0x30] sm:$0xff] }
 0x729   : > { %v3568_v54 = vld [vmem:[#allocation9 + $0x50] sm:$0xff] }
 0x72b   : > { %v2619_v57 = vpop.f32.mrb[42].mxu0 }
 0x72c   : > { %v2709_v58 = vadd.f32 %v2708_v48, %v2619_v57  ;;  %v4577_v59 = vpop.f32.mrb[43].mxu0  ;;  %v4896_v48 = vpack.c.bf16 %v3565_v47, %v3564_v46  ;;  %v3570_v57 = vld [vmem:[#allocation9 + $0x60] sm:$0xff] }
 0x72f   : > { %v2624_v60 = vpop.f32.mrb[44].mxu0 }
 0x730   : > { %v2714_v61 = vadd.f32 %v2713_v50, %v2624_v60  ;;  %v4580_v62 = vpop.f32.mrb[45].mxu0  ;;  %v3567_v50 = vld [vmem:[#allocation9 + $0x48] sm:$0xff] }
 0x731   : > { %v4899_v51 = vpack.c.bf16 %v3567_v50, %v3566_v49 }
 0x733   : > { %v2796_v63 = vpop.f32.mrb[46].mxu0 }
 0x734   : > { %v4604_v0 = vpop.f32.mrb[47].mxu0  ;;  %4614 = vmatmul.mubr.msk.f32.vlgmr.msra.gmra.mrb[78].mxu1 %vm2538_vm6, %v2796_v63 }
 0x735   : > { %4616 = vmatprep.mubr.msk.f32.mxu1 %vm5213_vm2, %v5214_v53 }
 0x737   : > { %v2801_v1 = vpop.f32.mrb[48].mxu0 }
 0x738   : > { %v4607_v2 = vpop.f32.mrb[49].mxu0  ;;  %4617 = vmatmul.mubr.msk.f32.gmra.mrb[80].mxu1 %vm2538_vm6, %v2801_v1 }
 0x739   : > { %4619 = vmatprep.mubr.msk.f32.mxu1 %vm5213_vm2, %v5214_v53 }
 0x73b   : > { %v2806_v3 = vpop.f32.mrb[50].mxu0 }
 0x73c   : > { %4620 = vmatmul.mubr.msk.f32.gmra.mrb[82].mxu1 %vm2538_vm6, %v2806_v3  ;;  %v4610_v4 = vpop.f32.mrb[51].mxu0 }
 0x73d   : > { %4637 = vmatprep.mubr.msk.f32.mxu1 %vm5213_vm2, %v5214_v53  ;;  %v3396_v4 = vpop.permute.xlu0 %3395 }
 0x807   : > { %v2887_v5 = vpop.f32.mrb[78].mxu1 }
 0x808   : > { %v2901_v6 = vadd.f32 %v2887_v5, %v2704_v55  ;;  %v4615_v7 = vpop.f32.mrb[79].mxu1  ;;  %v3569_v55 = vld [vmem:[#allocation9 + $0x58] sm:$0xff] }
 0x809   : > { %v4902_v56 = vpack.c.bf16 %v3569_v55, %v3568_v54 }
 0x80a   : > { %v2922_v10 = vadd.f32 %v2910_v8, %v2901_v6  ;;  %v3482_v6 = vrot.slane %v3400_v36, 2  ;;  %v3572_v8 = vld [vmem:[#allocation9 + $0x70] sm:$0xff] }
 0x80b   : > { %v2892_v9 = vpop.f32.mrb[80].mxu1 }
 0x80c   : > { %v2902_v11 = vadd.f32 %v2892_v9, %v2709_v58  ;;  %v4618_v12 = vpop.f32.mrb[81].mxu1  ;;  %v2925_v16 = vmax.f32 %v2922_v10, 0.0  ;;  %v3571_v58 = vld [vmem:[#allocation9 + $0x68] sm:$0xff]  ;;  %v3573_v9 = vld [vmem:[#allocation9 + $0x78] sm:$0xff] }
 0x80d   : > { %v4905_v59 = vpack.c.bf16 %v3571_v58, %v3570_v57  ;;  %v4908_v10 = vpack.c.bf16 %v3573_v9, %v3572_v8 }
 0x80e   : > { %v2923_v14 = vadd.f32 %v2915_v13, %v2902_v11  ;;  %v3401_v11 = vld [vmem:[#allocation7] sm:$0x1] }
 0x80f   : > { %v2897_v15 = vpop.f32.mrb[82].mxu1 }
 0x810   : > { %v2926_v17 = vmax.f32 %v2923_v14, 0.0  ;;  %v2903_v18 = vadd.f32 %v2897_v15, %v2714_v61  ;;  %v4621_v19 = vpop.f32.mrb[83].mxu1  ;;  %v3574_v15 = vld [vmem:[#allocation10] sm:$0x1] }
 0x812   : > { %v4878_v21 = vpack.c.bf16 %v2926_v17, %v2925_v16  ;;  %v2924_v22 = vadd.f32 %v2920_v20, %v2903_v18 }
 0x814   : > { %4879 = vmatpush3.bf16.msra.mxu0 %v4878_v21  ;;  %4882 = vmatpush3.bf16.msra.mxu1 %v4878_v21  ;;  %v2927_v23 = vmax.f32 %v2924_v22, 0.0 }
 0x815   : > { %4626 = vmatprep.subr.mxu0 %v5214_v53  ;;  %4635 = vmatprep.subr.mxu1 %v5214_v53 }
 0x818   : > { %4627 = vmatpush3.msk.msra.mxu0 %vm2933_vm7, %v2927_v23  ;;  %4636 = vmatpush3.msk.msra.mxu1 %vm2933_vm7, %v2927_v23 }
 0x819   : > { %4638 = vmatmul.mubr.msk.f32.vlgmr.msra.gmra.mrb[84].mxu1 %vm2929_vm8, %v3915_v24  ;;  %4883 = vmatprep.subr.bf16.mxu1 %v5212_v52 }
 0x81a   : > { %4885 = vmatpush3.bf16.msra.mxu1 %v4878_v21  ;;  %4629 = vmatmul.mubr.msk.f32.vlgmr.msra.gmra.mrb[52].mxu0 %vm2929_vm8, %v2928_v25 }
 0x81b   : > { %4654 = vmatprep.subr.mxu1 %v5214_v53  ;;  %4656 = vmatprep.mubr.msk.f32.mxu1 %vm5213_vm2, %v5214_v53 }
 0x81c   : > { %4640 = vmatprep.subr.mxu0 %v5214_v53  ;;  %4642 = vmatprep.mubr.msk.f32.mxu0 %vm5213_vm2, %v5214_v53 }
 0x81d   : > { %4641 = vmatpush3.msk.msra.mxu0 %vm2933_vm7, %v3918_v27 }
 0x81e   : > { %4655 = vmatpush3.msk.msra.mxu1 %vm2933_vm7, %v2927_v23  ;;  %4645 = vmatprep.subr.mxu0 %v5214_v53 }
 0x81f   : > { %4657 = vmatmul.mubr.msk.f32.vlgmr.msra.gmra.mrb[86].mxu1 %vm2929_vm8, %v3923_v26  ;;  %4664 = vmatprep.subr.mxu1 %v5214_v53 }
 0x820   : > { %4666 = vmatprep.mubr.msk.f32.mxu1 %vm5213_vm2, %v5214_v53  ;;  %4665 = vmatpush3.msk.msra.mxu1 %vm3406_vm10, %v3400_v36 }
 0x821   : > { %4669 = vmatprep.subr.mxu1 %v5214_v53 }
 0x8ec   : > { %v3079_v29 = vpop.f32.mrb[84].mxu1 }
 0x8ed   : > { %4643 = vmatmul.mubr.msk.f32.vlgmr.msra.gmra.mrb[54].mxu0 %vm3085_vm9, %v3079_v29  ;;  %v3003_v30 = vpop.f32.mrb[52].mxu0  ;;  %v4639_v31 = vpop.f32.mrb[85].mxu1 }
 0x8ee   : > { %4646 = vmatpush3.msk.msra.mxu0 %vm2933_vm7, %v3007_v28  ;;  %4647 = vmatprep.mubr.msk.f32.mxu0 %vm5213_vm2, %v5214_v53  ;;  %v4630_v32 = vpop.f32.mrb[53].mxu0 }
 0x8ef   : > { %4659 = vmatprep.subr.mxu0 %v5214_v53 }
 0x8f1   : > { %4648 = vmatmul.mubr.msk.f32.vlgmr.msra.gmra.mrb[56].mxu0 %vm3085_vm9, %v3003_v30 }
 0x8f2   : > { %v3309_v34 = vpop.f32.mrb[86].mxu1  ;;  %4660 = vmatpush3.msk.msra.mxu0 %vm2933_vm7, %v3926_v33  ;;  %4661 = vmatprep.mubr.msk.f32.mxu0 %vm5213_vm2, %v5214_v53 }
 0x8f3   : > { %v4658_v35 = vpop.f32.mrb[87].mxu1  ;;  %4886 = vmatprep.subr.bf16.mxu0 %v5212_v52 }
 0x8f5   : > { %4662 = vmatmul.mubr.msk.f32.vlgmr.msra.gmra.mrb[58].mxu0 %vm3085_vm9, %v3309_v34 }
 0x8f6   : > { %4706 = vmatprep.mubr.msk.f32.mxu0 %vm5213_vm2, %v5214_v53  ;;  %4888 = vmatpush3.bf16.msra.mxu0 %v4887_v40 }
 0x8f7   : > { %4889 = vmatprep.subr.bf16.mxu0 %v5212_v52 }
 0x8fa   : > { %4891 = vmatpush3.bf16.msra.mxu0 %v4890_v42 }
 0x8fb   : > { %4892 = vmatprep.subr.bf16.mxu0 %v5212_v52 }
 0x8fe   : > { %4894 = vmatpush3.bf16.msra.mxu0 %v4893_v45 }
 0x8ff   : > { %4895 = vmatprep.subr.bf16.mxu0 %v5212_v52 }
 0x902   : > { %4897 = vmatpush3.bf16.msra.mxu0 %v4896_v48 }
 0x903   : > { %4898 = vmatprep.subr.bf16.mxu0 %v5212_v52 }
 0x906   : > { %4900 = vmatpush3.bf16.msra.mxu0 %v4899_v51 }
 0x907   : > { %4901 = vmatprep.subr.bf16.mxu0 %v5212_v52 }
 0x90a   : > { %4903 = vmatpush3.bf16.msra.mxu0 %v4902_v56 }
 0x90b   : > { %4904 = vmatprep.subr.bf16.mxu0 %v5212_v52 }
 0x90e   : > { %4906 = vmatpush3.bf16.msra.mxu0 %v4905_v59 }
 0x90f   : > { %4907 = vmatprep.subr.bf16.mxu0 %v5212_v52 }
 0x912   : > { %4909 = vmatpush3.bf16.msra.mxu0 %v4908_v10 }
 0x9c0   : > { %v3158_v60 = vpop.f32.mrb[54].mxu0 }
 0x9c1   : > { %v4644_v61 = vpop.f32.mrb[55].mxu0 }
 0x9c4   : > { %v3234_v62 = vpop.f32.mrb[56].mxu0 }
 0x9c5   : > { %v3235_v63 = vadd.f32 %v3234_v62, %v3158_v60  ;;  %v4649_v0 = vpop.f32.mrb[57].mxu0 }
 0x9c8   : > { %v3387_v1 = vpop.f32.mrb[58].mxu0 }
 0x9c9   : > { %v3391_v2 = vadd.f32 %v3387_v1, %v3235_v63  ;;  %v4663_v3 = vpop.f32.mrb[59].mxu0 }
 0x9cb   : > { %v3398_v5 = vadd.f32 %v3396_v4, %v3391_v2 }
 0x9cd   : > { %v3399_v7 = vmax.f32 %v3398_v5, 0.0 }
 0x9cf   : > { %4667 = vmatmul.mubr.msk.f32.vlgmr.msra.gmra.mrb[88].mxu1 %vm3402_vm11, %v3399_v7  ;;  %v3481_v52 = vrot.slane %v3399_v7, 1 }
 0x9d0   : > { %4670 = vmatpush3.msk.msra.mxu1 %vm3406_vm10, %v3482_v6  ;;  %4671 = vmatprep.mubr.msk.f32.mxu1 %vm5213_vm2, %v5214_v53 }
 0x9d7   : > { %4672 = vmatmul.mubr.msk.f32.vlgmr.msra.gmra.mrb[88].mxu1 %vm3402_vm11, %v3481_v52 }
 0xaaa   : > { %v3553_v12 = vpop.f32.mrb[88].mxu1 }
 0xaab   : > { %v4910_v13 = vadd.f32 %v3553_v12, %v3401_v11  ;;  %v4673_v14 = vpop.f32.mrb[89].mxu1 }
 0xaad   : > { %4707 = vmatmul.mubr.f32.vlgmr.msra.gmra.mrb[60].mxu0 %v4910_v13 }
 0xb80   : > { %v3641_v16 = vpop.f32.mrb[60].mxu0 }
 0xb81   : > { %v3642_v17 = vadd.f32 %v3641_v16, %v3574_v15  ;;  %v4708_v18 = vpop.f32.mrb[61].mxu0 }
 0xb83   : > { %3645 = vst [vmem:[%s626_s21] sm:$0x1] %v3642_v17 }
 0xb84 PF: > { %s6153_s19 = sld [smem:[#allocation16_spill]] }
 0xb8a   : > { %s31_s24 = sadd.s32 1, %s6153_s19  }
 0xb8b   : > { %p28_p9 = scmp.ge.s32.totalorder %s31_s24, 4  }
 0xb8d   :  { %30 = sbr.rel (!%p28_p9) target bundleno = 11 (0xb), region = 159 }
 0xb94   :  { %3663 = vsyncpa [#allocation3], 1 }
 0xb95   :  { %3665 = vsyncpa [#allocation3 + $0x1], 1 }
 0xb96   :  { %3666 = vsyncpa [#allocation5], 1 }
 0xb97   :  { %3667 = vsyncpa [#allocation8], 1 }
 0xb98   :  { %3668 = vsyncpa [#allocation11], 1 }

</bundles_post_ra>
